<compile_context>
chip_gen: v6e
topology: v6e:2x2x1
jax: 0.10.0
libtpu: 0.0.40
codegen_flags: <defaults>
</compile_context>

<pallas_src>
import jax
import jax.numpy as jnp
import numpy as np
from jax.experimental import pallas as pl
from jax.experimental.pallas import tpu as pltpu


_VMEM_SPEC = pl.BlockSpec(memory_space=pltpu.MemorySpace.VMEM)


# ---------------------------------------------------------------------------
# Fused Pallas kernel: conv1 + conv2 + flatten + both heads
# ---------------------------------------------------------------------------
def _fused_forward_kernel(x1_ref, x2_ref, x3_ref,
                          g1_ref, bf1_ref, g2_ref, bf2_ref,
                          wa_ref, wb_ref, wl_ref, bh_ref,
                          h1_ref, h2_ref, dc1_ref, dc2_ref):
    # conv1 / conv2 as Toeplitz matmuls; result is already relu(conv).view(B,-1)
    # in PyTorch NCHW flatten order, lane-dense (last dim multiple of 128).
    dc1 = jnp.maximum(
        jnp.dot(x1_ref[...], g1_ref[...], preferred_element_type=jnp.float32)
        + bf1_ref[...], 0.0)
    dc2 = jnp.maximum(
        jnp.dot(x2_ref[...], g2_ref[...], preferred_element_type=jnp.float32)
        + bf2_ref[...], 0.0)
    dc1_ref[...] = dc1          # (B, 16*OH1*OW1)
    dc2_ref[...] = dc2          # (B, 16*OH2*OW2)

    # Both heads in one stacked pass: columns [0:A] -> head1, [A:2A] -> head2.
    # The x3 column (/4 folded into wl at prep time) is a rank-1 VPU update,
    # so x4/x5 never exist.
    x3v = x3_ref[...]                                   # (B, 2)
    h = (jnp.dot(dc1, wa_ref[...], preferred_element_type=jnp.float32)
         + jnp.dot(dc2, wb_ref[...], preferred_element_type=jnp.float32)
         + x3v[:, 0:1] * wl_ref[0:1, :]
         + x3v[:, 1:2] * wl_ref[1:2, :]
         + bh_ref[...])                                 # (B, 2A)
    n_act = h1_ref.shape[1]
    h1_ref[...] = h[:, :n_act]
    h2_ref[...] = h[:, n_act:2 * n_act]


# ---------------------------------------------------------------------------
# One-time parameter preparation (hoisted out of the per-step forward)
# ---------------------------------------------------------------------------
def _conv2x2_toeplitz(w, b, H, W):
    """Conv2d(C->16, k=2, stride=1) weight -> Toeplitz matrix.

    Returns G: (C*H*W, 16*OH*OW) with x.reshape(B,-1) @ G == conv(x).view(B,-1)
    (NCHW flatten order), and bflat: (1, 16*OH*OW) the per-position bias.
    """
    O, C, KH, KW = w.shape
    OH, OW = H - KH + 1, W - KW + 1
    P = OH * OW
    w = w.astype(jnp.float32)
    eye_i = jnp.eye(OH, dtype=jnp.float32)
    eye_j = jnp.eye(OW, dtype=jnp.float32)
    # G6[c, i+kh, j+kw, o, i, j] = w[o, c, kh, kw]
    G6 = jnp.zeros((C, H, W, O, OH, OW), dtype=jnp.float32)
    for kh in range(KH):
        for kw in range(KW):
            blk = (w[:, :, kh, kw].T[:, None, None, :, None, None]   # (C,1,1,O,1,1)
                   * eye_i[None, :, None, None, :, None]             # (1,OH,1,1,OH,1)
                   * eye_j[None, None, :, None, None, :])            # (1,1,OW,1,1,OW)
            G6 = G6.at[:, kh:kh + OH, kw:kw + OW, :, :, :].add(blk)
    G = G6.reshape(C * H * W, O * P)
    bflat = jnp.broadcast_to(b.astype(jnp.float32)[:, None], (O, P)).reshape(1, O * P)
    return G, bflat


def prepare_params(params, spatial_shapes):
    """Build all kernel-ready operands once (no per-call transposes/reshapes)."""
    (H1, W1), (H2, W2) = spatial_shapes
    g1, bflat1 = _conv2x2_toeplitz(params["w_conv11"], params["b_conv11"], H1, W1)
    g2, bflat2 = _conv2x2_toeplitz(params["w_conv21"], params["b_conv21"], H2, W2)
    F1 = bflat1.shape[1]          # 16 * OH1 * OW1
    F2 = bflat2.shape[1]          # 16 * OH2 * OW2
    A = params["w_head1"].shape[0]

    w1t = params["w_head1"].astype(jnp.float32).T      # (F1+F2+1, A)
    w2t = params["w_head2"].astype(jnp.float32).T
    # Row-wise split + stack the two heads along N -> single (F, 2A) operands.
    wA = jnp.concatenate([w1t[:F1], w2t[:F1]], axis=1)                 # (F1, 2A)
    wB = jnp.concatenate([w1t[F1:F1 + F2], w2t[F1:F1 + F2]], axis=1)   # (F2, 2A)
    # Last row acts on x3[:,0]/4 (head1) and x3[:,1]/4 (head2); fold the /4 in.
    wlast = jnp.zeros((2, 2 * A), jnp.float32)
    wlast = wlast.at[0, :A].set(w1t[F1 + F2] * 0.25)
    wlast = wlast.at[1, A:].set(w2t[F1 + F2] * 0.25)
    bh = jnp.concatenate(
        [params["b_head1"], params["b_head2"]]).astype(jnp.float32).reshape(1, 2 * A)

    return {"g1": g1, "bflat1": bflat1, "g2": g2, "bflat2": bflat2,
            "wA": wA, "wB": wB, "wlast": wlast, "bh": bh}


# ---------------------------------------------------------------------------
# Forward (single pallas_call; only casts + free bitcast reshapes outside)
# ---------------------------------------------------------------------------
def dqn_track_video_forward(prepped, x1, x2, x3):
    """Replicates DQN_track_video.forward(x1, x2, x3)."""
    B = x1.shape[0]
    A = prepped["bh"].shape[1] // 2
    F1 = prepped["bflat1"].shape[1]
    F2 = prepped["bflat2"].shape[1]

    # .float() + NCHW flatten; trailing-dim collapse is a free layout bitcast.
    x1f = x1.astype(jnp.float32).reshape(B, -1)
    x2f = x2.astype(jnp.float32).reshape(B, -1)
    x3f = x3.astype(jnp.float32)

    h1, h2, dc1, dc2 = pl.pallas_call(
        _fused_forward_kernel,
        out_shape=(
            jax.ShapeDtypeStruct((B, A), jnp.float32),
            jax.ShapeDtypeStruct((B, A), jnp.float32),
            jax.ShapeDtypeStruct((B, F1), jnp.float32),
            jax.ShapeDtypeStruct((B, F2), jnp.float32),
        ),
        in_specs=[_VMEM_SPEC] * 11,
        out_specs=(_VMEM_SPEC, _VMEM_SPEC, _VMEM_SPEC, _VMEM_SPEC),
    )(x1f, x2f, x3f,
      prepped["g1"], prepped["bflat1"], prepped["g2"], prepped["bflat2"],
      prepped["wA"], prepped["wB"], prepped["wlast"], prepped["bh"])

    # TODO(synk): torch .detach()/.to(device) are autograd/placement no-ops;
    # forward values are identical so there is nothing to translate.
    return h1, h2, dc1, dc2


# ---------------------------------------------------------------------------
# Deterministic parameter init (shapes match the nn.Module __init__)
# ---------------------------------------------------------------------------
def init_params(key, in_channels, fovea_patch_num, periphery_patch_num, n_actions=14):
    num_f = fovea_patch_num - 1
    num_p = periphery_patch_num - 1
    feat = (num_p * num_p + num_f * num_f) * 16 + 1

    ks = jax.random.split(key, 8)

    def u(k, shape, fan_in):
        bound = 1.0 / (fan_in ** 0.5)
        return jax.random.uniform(k, shape, jnp.float32, -bound, bound)

    return {
        "w_conv11": u(ks[0], (16, in_channels[0], 2, 2), in_channels[0] * 4),
        "b_conv11": u(ks[1], (16,), in_channels[0] * 4),
        "w_conv21": u(ks[2], (16, in_channels[1], 2, 2), in_channels[1] * 4),
        "b_conv21": u(ks[3], (16,), in_channels[1] * 4),
        "w_head1": u(ks[4], (n_actions, feat), feat),
        "b_head1": u(ks[5], (n_actions,), feat),
        "w_head2": u(ks[6], (n_actions, feat), feat),
        "b_head2": u(ks[7], (n_actions,), feat),
    }


# ---------------------------------------------------------------------------
# Pure-JAX reference (mirrors the PyTorch module) for a correctness check
# ---------------------------------------------------------------------------
def _reference_forward(params, x1, x2, x3):
    def conv_relu(x, w, b):
        y = jax.lax.conv_general_dilated(
            x.astype(jnp.float32), w.astype(jnp.float32),
            window_strides=(1, 1), padding="VALID",
            dimension_numbers=("NCHW", "OIHW", "NCHW"))
        return jax.nn.relu(y + b.astype(jnp.float32)[None, :, None, None])

    B = x1.shape[0]
    d1 = conv_relu(x1, params["w_conv11"], params["b_conv11"]).reshape(B, -1)
    d2 = conv_relu(x2, params["w_conv21"], params["b_conv21"]).reshape(B, -1)
    x = jnp.concatenate([d1, d2], axis=1)
    x3f = x3.astype(jnp.float32) / 4.0
    x4 = jnp.concatenate([x, x3f[:, 0:1]], axis=1)
    x5 = jnp.concatenate([x, x3f[:, 1:2]], axis=1)
    h1 = x4 @ params["w_head1"].astype(jnp.float32).T + params["b_head1"]
    h2 = x5 @ params["w_head2"].astype(jnp.float32).T + params["b_head2"]
    return h1, h2, d1, d2


if __name__ == "__main__":
    key = jax.random.PRNGKey(0)
    in_channels = (3, 3)
    fovea_patch_num = 5       # x1 spatial 5x5 -> conv out 4x4
    periphery_patch_num = 9   # x2 spatial 9x9 -> conv out 8x8
    n_actions = 14
    B = 2

    k1, k2, k3, kp = jax.random.split(key, 4)
    x1 = jax.random.normal(
        k1, (B, in_channels[0], fovea_patch_num, fovea_patch_num), jnp.float32)
    x2 = jax.random.normal(
        k2, (B, in_channels[1], periphery_patch_num, periphery_patch_num), jnp.float32)
    x3 = jax.random.randint(k3, (B, 2), 0, 8).astype(jnp.float32)

    params = init_params(kp, in_channels, fovea_patch_num, periphery_patch_num,
                         n_actions)

    # One-time parameter preparation (hoisted out of the hot path).
    prepped = prepare_params(
        params,
        ((fovea_patch_num, fovea_patch_num),
         (periphery_patch_num, periphery_patch_num)))

    fwd = jax.jit(dqn_track_video_forward)
    head1, head2, data_conv1, data_conv2 = fwd(prepped, x1, x2, x3)
    jax.block_until_ready((head1, head2, data_conv1, data_conv2))

    assert head1.shape == (B, n_actions)
    assert head2.shape == (B, n_actions)
    assert data_conv1.shape == (B, 16 * (fovea_patch_num - 1) ** 2)
    assert data_conv2.shape == (B, 16 * (periphery_patch_num - 1) ** 2)

    # Numerical check against the plain-JAX reference of the PyTorch module.
    r1, r2, rd1, rd2 = _reference_forward(params, x1, x2, x3)
    np.testing.assert_allclose(np.asarray(data_conv1), np.asarray(rd1),
                               rtol=2e-2, atol=2e-2)
    np.testing.assert_allclose(np.asarray(data_conv2), np.asarray(rd2),
                               rtol=2e-2, atol=2e-2)
    np.testing.assert_allclose(np.asarray(head1), np.asarray(r1),
                               rtol=2e-2, atol=2e-2)
    np.testing.assert_allclose(np.asarray(head2), np.asarray(r2),
                               rtol=2e-2, atol=2e-2)

    print("KERNEL_OK")
</pallas_src>

<mosaic_0001>
module attributes {stable_mosaic.version = 11 : i64} {
  func.func @_fused_forward_kernel(%arg0: memref<2x75xf32, #tpu.memory_space<vmem>>, %arg1: memref<2x243xf32, #tpu.memory_space<vmem>>, %arg2: memref<2x2xf32, #tpu.memory_space<vmem>>, %arg3: memref<75x256xf32, #tpu.memory_space<vmem>>, %arg4: memref<1x256xf32, #tpu.memory_space<vmem>>, %arg5: memref<243x1024xf32, #tpu.memory_space<vmem>>, %arg6: memref<1x1024xf32, #tpu.memory_space<vmem>>, %arg7: memref<256x28xf32, #tpu.memory_space<vmem>>, %arg8: memref<1024x28xf32, #tpu.memory_space<vmem>>, %arg9: memref<2x28xf32, #tpu.memory_space<vmem>>, %arg10: memref<1x28xf32, #tpu.memory_space<vmem>>, %arg11: memref<2x14xf32, #tpu.memory_space<vmem>>, %arg12: memref<2x14xf32, #tpu.memory_space<vmem>>, %arg13: memref<2x256xf32, #tpu.memory_space<vmem>>, %arg14: memref<2x1024xf32, #tpu.memory_space<vmem>>) attributes {dimension_semantics = [], scalar_prefetch = 0 : i64, scratch_operands = 0 : i64, tpu.core_type = #tpu.core_type<tc>} {
    %c0 = arith.constant 0 : index
    %c0_0 = arith.constant 0 : index
    %0 = vector.load %arg0[%c0, %c0_0] : memref<2x75xf32, #tpu.memory_space<vmem>>, vector<2x75xf32>
    %c0_1 = arith.constant 0 : index
    %c0_2 = arith.constant 0 : index
    %1 = vector.load %arg3[%c0_1, %c0_2] : memref<75x256xf32, #tpu.memory_space<vmem>>, vector<75x256xf32>
    %cst = arith.constant dense<0.000000e+00> : vector<2x256xf32>
    %2 = tpu.matmul %0, %1, %cst {dimension_numbers = #tpu.dot_dimension_numbers<[1], [0], [0], [1], [0, 0, 1, 1], [], []>} : vector<2x75xf32>, vector<75x256xf32>, vector<2x256xf32> -> vector<2x256xf32>
    %c0_3 = arith.constant 0 : index
    %c0_4 = arith.constant 0 : index
    %3 = vector.load %arg4[%c0_3, %c0_4] : memref<1x256xf32, #tpu.memory_space<vmem>>, vector<1x256xf32>
    %4 = vector.broadcast %3 : vector<1x256xf32> to vector<2x256xf32>
    %5 = arith.addf %2, %4 : vector<2x256xf32>
    %cst_5 = arith.constant 0.000000e+00 : f32
    %6 = vector.broadcast %cst_5 : f32 to vector<2x256xf32>
    %7 = arith.maximumf %5, %6 : vector<2x256xf32>
    %c0_6 = arith.constant 0 : index
    %c0_7 = arith.constant 0 : index
    %8 = vector.load %arg1[%c0_6, %c0_7] : memref<2x243xf32, #tpu.memory_space<vmem>>, vector<2x243xf32>
    %c0_8 = arith.constant 0 : index
    %c0_9 = arith.constant 0 : index
    %9 = vector.load %arg5[%c0_8, %c0_9] : memref<243x1024xf32, #tpu.memory_space<vmem>>, vector<243x1024xf32>
    %cst_10 = arith.constant dense<0.000000e+00> : vector<2x1024xf32>
    %10 = tpu.matmul %8, %9, %cst_10 {dimension_numbers = #tpu.dot_dimension_numbers<[1], [0], [0], [1], [0, 0, 1, 1], [], []>} : vector<2x243xf32>, vector<243x1024xf32>, vector<2x1024xf32> -> vector<2x1024xf32>
    %c0_11 = arith.constant 0 : index
    %c0_12 = arith.constant 0 : index
    %11 = vector.load %arg6[%c0_11, %c0_12] : memref<1x1024xf32, #tpu.memory_space<vmem>>, vector<1x1024xf32>
    %12 = vector.broadcast %11 : vector<1x1024xf32> to vector<2x1024xf32>
    %13 = arith.addf %10, %12 : vector<2x1024xf32>
    %cst_13 = arith.constant 0.000000e+00 : f32
    %14 = vector.broadcast %cst_13 : f32 to vector<2x1024xf32>
    %15 = arith.maximumf %13, %14 : vector<2x1024xf32>
    %c0_14 = arith.constant 0 : index
    %c0_15 = arith.constant 0 : index
    %16 = vector.load %arg13[%c0_14, %c0_15] : memref<2x256xf32, #tpu.memory_space<vmem>>, vector<2x256xf32>
    tpu.vector_store %arg13[%c0_14, %c0_15], %7 {strides = array<i32>} : memref<2x256xf32, #tpu.memory_space<vmem>>, vector<2x256xf32>,
    %c0_16 = arith.constant 0 : index
    %c0_17 = arith.constant 0 : index
    %17 = vector.load %arg14[%c0_16, %c0_17] : memref<2x1024xf32, #tpu.memory_space<vmem>>, vector<2x1024xf32>
    tpu.vector_store %arg14[%c0_16, %c0_17], %15 {strides = array<i32>} : memref<2x1024xf32, #tpu.memory_space<vmem>>, vector<2x1024xf32>,
    %c0_18 = arith.constant 0 : index
    %c0_19 = arith.constant 0 : index
    %18 = vector.load %arg2[%c0_18, %c0_19] : memref<2x2xf32, #tpu.memory_space<vmem>>, vector<2x2xf32>
    %c0_20 = arith.constant 0 : index
    %c0_21 = arith.constant 0 : index
    %19 = vector.load %arg7[%c0_20, %c0_21] : memref<256x28xf32, #tpu.memory_space<vmem>>, vector<256x28xf32>
    %cst_22 = arith.constant dense<0.000000e+00> : vector<2x28xf32>
    %20 = tpu.matmul %7, %19, %cst_22 {dimension_numbers = #tpu.dot_dimension_numbers<[1], [0], [0], [1], [0, 0, 1, 1], [], []>} : vector<2x256xf32>, vector<256x28xf32>, vector<2x28xf32> -> vector<2x28xf32>
    %c0_23 = arith.constant 0 : index
    %c0_24 = arith.constant 0 : index
    %21 = vector.load %arg8[%c0_23, %c0_24] : memref<1024x28xf32, #tpu.memory_space<vmem>>, vector<1024x28xf32>
    %cst_25 = arith.constant dense<0.000000e+00> : vector<2x28xf32>
    %22 = tpu.matmul %15, %21, %cst_25 {dimension_numbers = #tpu.dot_dimension_numbers<[1], [0], [0], [1], [0, 0, 1, 1], [], []>} : vector<2x1024xf32>, vector<1024x28xf32>, vector<2x28xf32> -> vector<2x28xf32>
    %23 = arith.addf %20, %22 : vector<2x28xf32>
    %24 = vector.extract_strided_slice %18 {offsets = [0, 0], sizes = [2, 1], strides = [1, 1]} : vector<2x2xf32> to vector<2x1xf32>
    %c0_26 = arith.constant 0 : index
    %c0_27 = arith.constant 0 : index
    %25 = vector.load %arg9[%c0_26, %c0_27] : memref<2x28xf32, #tpu.memory_space<vmem>>, vector<1x28xf32>
    %26 = vector.broadcast %24 : vector<2x1xf32> to vector<2x28xf32>
    %27 = vector.broadcast %25 : vector<1x28xf32> to vector<2x28xf32>
    %28 = arith.mulf %26, %27 : vector<2x28xf32>
    %29 = arith.addf %23, %28 : vector<2x28xf32>
    %30 = vector.extract_strided_slice %18 {offsets = [0, 1], sizes = [2, 1], strides = [1, 1]} : vector<2x2xf32> to vector<2x1xf32>
    %c1 = arith.constant 1 : index
    %c0_28 = arith.constant 0 : index
    %31 = vector.load %arg9[%c1, %c0_28] : memref<2x28xf32, #tpu.memory_space<vmem>>, vector<1x28xf32>
    %32 = vector.broadcast %30 : vector<2x1xf32> to vector<2x28xf32>
    %33 = vector.broadcast %31 : vector<1x28xf32> to vector<2x28xf32>
    %34 = arith.mulf %32, %33 : vector<2x28xf32>
    %35 = arith.addf %29, %34 : vector<2x28xf32>
    %c0_29 = arith.constant 0 : index
    %c0_30 = arith.constant 0 : index
    %36 = vector.load %arg10[%c0_29, %c0_30] : memref<1x28xf32, #tpu.memory_space<vmem>>, vector<1x28xf32>
    %37 = vector.broadcast %36 : vector<1x28xf32> to vector<2x28xf32>
    %38 = arith.addf %35, %37 : vector<2x28xf32>
    %39 = vector.extract_strided_slice %38 {offsets = [0, 0], sizes = [2, 14], strides = [1, 1]} : vector<2x28xf32> to vector<2x14xf32>
    %c0_31 = arith.constant 0 : index
    %c0_32 = arith.constant 0 : index
    %40 = vector.load %arg11[%c0_31, %c0_32] : memref<2x14xf32, #tpu.memory_space<vmem>>, vector<2x14xf32>
    tpu.vector_store %arg11[%c0_31, %c0_32], %39 {strides = array<i32>} : memref<2x14xf32, #tpu.memory_space<vmem>>, vector<2x14xf32>,
    %41 = vector.extract_strided_slice %38 {offsets = [0, 14], sizes = [2, 14], strides = [1, 1]} : vector<2x28xf32> to vector<2x14xf32>
    %c0_33 = arith.constant 0 : index
    %c0_34 = arith.constant 0 : index
    %42 = vector.load %arg12[%c0_33, %c0_34] : memref<2x14xf32, #tpu.memory_space<vmem>>, vector<2x14xf32>
    tpu.vector_store %arg12[%c0_33, %c0_34], %41 {strides = array<i32>} : memref<2x14xf32, #tpu.memory_space<vmem>>, vector<2x14xf32>,
    return
  }
}

</mosaic_0001>

<bundles_post_ra>
// kernel: dqn_track_video_forward.1
= control target key start
LH: loop header
LB: loop body
LE: loop exit
PB: predicated region body
PF: predicated region fallthrough
CT: control target
= control target key end

     0   :  { %20 = vsyncpa [#allocation3], 0  ;;  %s3334_s0 = inlined_call_operand.vmem [shape: f32[2,75], index: 0, kind: input, shape index: {}]   ;;  %s3335_s1 = inlined_call_operand.vmem [shape: f32[2,243], index: 1, kind: input, shape index: {}]   ;;  %s3336_s2 = inlined_call_operand.hbm [shape: f32[2,2], index: 2, kind: input, shape index: {}]   ;;  %s3337_s3 = inlined_call_operand.hbm [shape: f32[75,256], index: 3, kind: input, shape index: {}]   ;;  %s3338_s4 = inlined_call_operand.hbm [shape: f32[1,256], index: 4, kind: input, shape index: {}]   ;;  %s3339_s5 = inlined_call_operand.vmem [shape: f32[243,1024], index: 5, kind: input, shape index: {}]   ;;  %s3340_s6 = inlined_call_operand.hbm [shape: f32[1,1024], index: 6, kind: input, shape index: {}]   ;;  %s3341_s7 = inlined_call_operand.vmem [shape: f32[256,28], index: 7, kind: input, shape index: {}]   ;;  %s3342_s8 = inlined_call_operand.vmem [shape: f32[1024,28], index: 8, kind: input, shape index: {}]   ;;  %s3343_s9 = inlined_call_operand.hbm [shape: f32[2,28], index: 9, kind: input, shape index: {}]   ;;  %s3344_s10 = inlined_call_operand.vmem [shape: f32[1,28], index: 10, kind: input, shape index: {}]   ;;  %s3345_s11 = inlined_call_operand.hbm [shape: f32[2,14], index: 11, kind: output, shape index: {0}]   ;;  %s3346_s12 = inlined_call_operand.hbm [shape: f32[2,14], index: 12, kind: output, shape index: {1}]   ;;  %s3347_s13 = inlined_call_operand.hbm [shape: f32[2,256], index: 13, kind: output, shape index: {2}]   ;;  %s3348_s14 = inlined_call_operand.hbm [shape: f32[2,1024], index: 14, kind: output, shape index: {3}]  }
   0x1   :  { %21 = vsyncpa [#allocation6], 0 }
   0x2   :  { %22 = vsyncpa [#allocation9], 0 }
   0x3   :  { %23 = vsyncpa [#allocation4], 0 }
   0x4   :  { %24 = vsyncpa [#allocation13], 0 }
   0x5   :  { %25 = vsyncpa [#allocation16], 0  ;;  %s1912_s29 = smov [#allocation5]  }
   0x6   :  { %s45_s30 = sshll.u32 %s1912_s29, 4  ;;  %s46_s30 = int_to_ptr.vmem [resolvable:$true] %s45_s30 }
   0x7   :  { %s1728_s15 = scalar_lea.vmem %s46_s30, 2560  ;;  %p1733_p1 = scmp.lt.s32.totalorder %s46_s30, %s46_s30 }
   0x8   :  { %p1729_p0 = scmp.ne.s32.totalorder %s46_s30, %s1728_s15  ;;  %p1734_p2 = scmp.lt.s32.totalorder %s1728_s15, %s1728_s15 }
   0xa   :  { %p1735_p3 = por %p1734_p2, %p1733_p1 }
   0xc   :  { %p1736_p4 = pnand %p1735_p3, %p1729_p0 }
   0xe   :  { %1739 = shalt.err (!%p1736_p4)
}
   0xf   :  { %s1913_s16 = smov 256   ;;  %s1914_s17 = smov 16  }
  0x10   :  { %51 = dma.hbm_to_vmem [thread:$0]  %s3337_s3, 2560, %s46_s30, [#allocation6], %s1913_s16, %s1913_s16, %s1914_s17  }
  0x11   :  { %s1915_s20 = smov [#allocation8]   ;;  %s1916_s22 = smov [#allocation2]  }
  0x12   :  { %s70_s21 = sshll.u32 %s1915_s20, 4  ;;  %s36_s23 = sshll.u32 %s1916_s22, 4  ;;  %s71_s21 = int_to_ptr.vmem [resolvable:$true] %s70_s21  ;;  %s37_s23 = int_to_ptr.vmem [resolvable:$true] %s36_s23 }
  0x13   :  { %s1748_s24 = scalar_lea.vmem %s71_s21, 128  ;;  %p1753_p6 = scmp.lt.s32.totalorder %s71_s21, %s71_s21 }
  0x14   :  { %p1749_p5 = scmp.ne.s32.totalorder %s71_s21, %s1748_s24  ;;  %p1754_p7 = scmp.lt.s32.totalorder %s1748_s24, %s1748_s24 }
  0x16   :  { %p1755_p8 = por %p1754_p7, %p1753_p6 }
  0x18   :  { %p1756_p9 = pnand %p1755_p8, %p1749_p5 }
  0x1a   :  { %1759 = shalt.err (!%p1756_p9)
}
  0x1b   :  { %73 = dma.hbm_to_vmem [thread:$0]  %s3340_s6, 128, %s71_s21, [#allocation9]  }
  0x1c   :  { %s1768_s27 = scalar_lea.vmem %s37_s23, 32  ;;  %p1773_p11 = scmp.lt.s32.totalorder %s37_s23, %s37_s23 }
  0x1d   :  { %p1769_p10 = scmp.ne.s32.totalorder %s37_s23, %s1768_s27  ;;  %p1774_p12 = scmp.lt.s32.totalorder %s1768_s27, %s1768_s27 }
  0x1f   :  { %p1775_p13 = por %p1774_p12, %p1773_p11 }
  0x21   :  { %p1776_p0 = pnand %p1775_p13, %p1769_p10 }
  0x23   :  { %1779 = shalt.err (!%p1776_p0)
}
  0x24   :  { %39 = dma.hbm_to_vmem [thread:$0]  %s3336_s2, 32, %s37_s23, [#allocation3]  }
  0x25   :  { %s1917_s29 = smov [#allocation7]   ;;  %s1918_s15 = smov [#allocation10]  }
  0x26   :  { %s58_s30 = sshll.u32 %s1917_s29, 4  ;;  %s84_s16 = sshll.u32 %s1918_s15, 4  ;;  %s59_s30 = int_to_ptr.vmem [resolvable:$true] %s58_s30  ;;  %s85_s16 = int_to_ptr.vmem [resolvable:$true] %s84_s16 }
  0x27   :  { %s1788_s17 = scalar_lea.vmem %s59_s30, 32  ;;  %p1793_p2 = scmp.lt.s32.totalorder %s59_s30, %s59_s30 }
  0x28   :  { %p1789_p1 = scmp.ne.s32.totalorder %s59_s30, %s1788_s17  ;;  %p1794_p3 = scmp.lt.s32.totalorder %s1788_s17, %s1788_s17 }
  0x2a   :  { %p1795_p4 = por %p1794_p3, %p1793_p2 }
  0x2c   :  { %p1796_p5 = pnand %p1795_p4, %p1789_p1 }
  0x2e   :  { %1799 = shalt.err (!%p1796_p5)
}
  0x2f   :  { %61 = dma.hbm_to_vmem [thread:$0]  %s3338_s4, 32, %s59_s30, [#allocation6]  }
  0x30   :  { %s1808_s19 = scalar_lea.vmem %s85_s16, 32  ;;  %p1813_p7 = scmp.lt.s32.totalorder %s85_s16, %s85_s16 }
  0x31   :  { %p1809_p6 = scmp.ne.s32.totalorder %s85_s16, %s1808_s19  ;;  %p1814_p8 = scmp.lt.s32.totalorder %s1808_s19, %s1808_s19 }
  0x33   :  { %p1815_p9 = por %p1814_p8, %p1813_p7 }
  0x35   :  { %p1816_p10 = pnand %p1815_p9, %p1809_p6 }
  0x37   :  { %1819 = shalt.err (!%p1816_p10)
}
  0x38   :  { %87 = dma.hbm_to_vmem [thread:$0]  %s3343_s9, 32, %s85_s16, [#allocation9]  }
  0x39   :  { %1900 = dma.done.wait [#allocation3], 32  }
  0x3a   :  { %1901 = vsyncadd [#allocation3], 4294967264 }
  0x3b   :  { %1902 = dma.done.wait [#allocation6], 2592  }
  0x3c   :  { %1903 = vsyncadd [#allocation6], 4294964704 }
  0x3d   :  { %1904 = dma.done.wait [#allocation9], 160  }
  0x3e   :  { %1905 = vsyncadd [#allocation9], 4294967136  ;;  %v1919_v0 = vmov 0.0   ;;  %vm142_vm0 = vcmask 1042432   ;;  %v125_v1 = vld [vmem:[#allocation5 + $0x98] sm:$0x7] }
  0x3f   :  { %213 = vmatprep.mubr.f32.mxu0 %v1919_v0  ;;  %v344_v2 = vld [vmem:[%s3339_s5 + $0x3c8] sm:$0xff]  ;;  %v124_v3 = vld [vmem:[#allocation5 + $0x90] sm:$0x7]  ;;  %1507 = vmatprep.subr.msk.mxu0 %vm142_vm0, %v125_v1  ;;  %v343_v4 = vld [vmem:[%s3339_s5 + $0x3c0] sm:$0xff]  ;;  %vm138_vm1 = vcmask 613376   ;;  %vm523_vm2 = vcmask 941056  }
  0x40   :  { %550 = vmatprep.subr.mxu1 %v344_v2  ;;  %v123_v5 = vld [vmem:[#allocation5 + $0x88] sm:$0xff]  ;;  %1508 = vmatpush1.msk.msra.mxu0 %vm142_vm0, %v124_v3  ;;  %v122_v7 = vld [vmem:[#allocation5 + $0x80] sm:$0xff]  ;;  %v121_v9 = vld [vmem:[#allocation5 + $0x78] sm:$0xff] }
  0x41   :  { %v336_v6 = vld [vmem:[%s3339_s5 + $0x388] sm:$0xff]  ;;  %551 = vmatpush1.msra.mxu1 %v343_v4  ;;  %v335_v8 = vld [vmem:[%s3339_s5 + $0x380] sm:$0xff]  ;;  %163 = vmatprep.subr.mxu0 %v123_v5  ;;  %v120_v11 = vld [vmem:[#allocation5 + $0x70] sm:$0xff] }
  0x42   :  { %552 = vmatprep.subr.mxu1 %v336_v6  ;;  %v328_v10 = vld [vmem:[%s3339_s5 + $0x348] sm:$0xff]  ;;  %v327_v12 = vld [vmem:[%s3339_s5 + $0x340] sm:$0xff]  ;;  %164 = vmatpush1.msra.mxu0 %v122_v7  ;;  %v116_v19 = vld [vmem:[#allocation5 + $0x50] sm:$0xff] }
  0x43   :  { %553 = vmatpush1.msra.mxu1 %v335_v8  ;;  %v119_v13 = vld [vmem:[#allocation5 + $0x68] sm:$0xff]  ;;  %165 = vmatprep.subr.mxu0 %v121_v9  ;;  %v118_v15 = vld [vmem:[#allocation5 + $0x60] sm:$0xff]  ;;  %v117_v17 = vld [vmem:[#allocation5 + $0x58] sm:$0xff] }
  0x44   :  { %v320_v14 = vld [vmem:[%s3339_s5 + $0x308] sm:$0xff]  ;;  %554 = vmatprep.subr.mxu1 %v328_v10  ;;  %v319_v16 = vld [vmem:[%s3339_s5 + $0x300] sm:$0xff]  ;;  %166 = vmatpush1.msra.mxu0 %v120_v11  ;;  %v112_v27 = vld [vmem:[#allocation5 + $0x30] sm:$0xff] }
  0x45   :  { %555 = vmatpush1.msra.mxu1 %v327_v12  ;;  %v312_v18 = vld [vmem:[%s3339_s5 + $0x2c8] sm:$0xff]  ;;  %167 = vmatprep.subr.mxu0 %v119_v13  ;;  %v311_v20 = vld [vmem:[%s3339_s5 + $0x2c0] sm:$0xff]  ;;  %v108_v35 = vld [vmem:[#allocation5 + $0x10] sm:$0xff] }
  0x46   :  { %556 = vmatprep.subr.mxu1 %v320_v14  ;;  %168 = vmatpush1.msra.mxu0 %v118_v15  ;;  %v115_v21 = vld [vmem:[#allocation5 + $0x48] sm:$0xff]  ;;  %v114_v23 = vld [vmem:[#allocation5 + $0x40] sm:$0xff]  ;;  %v113_v25 = vld [vmem:[#allocation5 + $0x38] sm:$0xff] }
  0x47   :  { %557 = vmatpush1.msra.mxu1 %v319_v16  ;;  %v304_v22 = vld [vmem:[%s3339_s5 + $0x288] sm:$0xff]  ;;  %169 = vmatprep.subr.mxu0 %v117_v17  ;;  %v303_v24 = vld [vmem:[%s3339_s5 + $0x280] sm:$0xff]  ;;  %v346_v42 = vld [vmem:[%s3339_s5 + $0x3d8] sm:$0xff] }
  0x48   :  { %558 = vmatprep.subr.mxu1 %v312_v18  ;;  %170 = vmatpush1.msra.mxu0 %v116_v19  ;;  %v296_v26 = vld [vmem:[%s3339_s5 + $0x248] sm:$0xff]  ;;  %v295_v28 = vld [vmem:[%s3339_s5 + $0x240] sm:$0xff]  ;;  %v345_v45 = vld [vmem:[%s3339_s5 + $0x3d0] sm:$0xff] }
  0x49   :  { %559 = vmatpush1.msra.mxu1 %v311_v20  ;;  %171 = vmatprep.subr.mxu0 %v115_v21  ;;  %v111_v29 = vld [vmem:[#allocation5 + $0x28] sm:$0xff]  ;;  %v110_v31 = vld [vmem:[#allocation5 + $0x20] sm:$0xff]  ;;  %v109_v33 = vld [vmem:[#allocation5 + $0x18] sm:$0xff] }
  0x4a   :  { %560 = vmatprep.subr.mxu1 %v304_v22  ;;  %172 = vmatpush1.msra.mxu0 %v114_v23  ;;  %v288_v30 = vld [vmem:[%s3339_s5 + $0x208] sm:$0xff]  ;;  %v287_v32 = vld [vmem:[%s3339_s5 + $0x200] sm:$0xff]  ;;  %v338_v47 = vld [vmem:[%s3339_s5 + $0x398] sm:$0xff] }
  0x4b   :  { %561 = vmatpush1.msra.mxu1 %v303_v24  ;;  %173 = vmatprep.subr.mxu0 %v113_v25  ;;  %v280_v34 = vld [vmem:[%s3339_s5 + $0x1c8] sm:$0xff]  ;;  %v279_v36 = vld [vmem:[%s3339_s5 + $0x1c0] sm:$0xff]  ;;  %v337_v49 = vld [vmem:[%s3339_s5 + $0x390] sm:$0xff] }
  0x4c   :  { %562 = vmatprep.subr.mxu1 %v296_v26  ;;  %174 = vmatpush1.msra.mxu0 %v112_v27  ;;  %v107_v37 = vld [vmem:[#allocation5 + $0x8] sm:$0xff]  ;;  %v106_v39 = vld [vmem:[#allocation5] sm:$0xff]  ;;  %v105_v43 = vld [vmem:[%s3334_s0] sm:$0x3] }
  0x4d   :  { %563 = vmatpush1.msra.mxu1 %v295_v28  ;;  %175 = vmatprep.subr.mxu0 %v111_v29  ;;  %v272_v38 = vld [vmem:[%s3339_s5 + $0x188] sm:$0xff]  ;;  %v271_v40 = vld [vmem:[%s3339_s5 + $0x180] sm:$0xff]  ;;  %v330_v51 = vld [vmem:[%s3339_s5 + $0x358] sm:$0xff] }
  0x4e   :  { %564 = vmatprep.subr.mxu1 %v288_v30  ;;  %176 = vmatpush1.msra.mxu0 %v110_v31  ;;  %v264_v41 = vld [vmem:[%s3339_s5 + $0x148] sm:$0xff]  ;;  %v263_v44 = vld [vmem:[%s3339_s5 + $0x140] sm:$0xff]  ;;  %v329_v53 = vld [vmem:[%s3339_s5 + $0x350] sm:$0xff] }
  0x4f   :  { %565 = vmatpush1.msra.mxu1 %v287_v32  ;;  %177 = vmatprep.subr.mxu0 %v109_v33  ;;  %v256_v46 = vld [vmem:[%s3339_s5 + $0x108] sm:$0xff]  ;;  %v255_v48 = vld [vmem:[%s3339_s5 + $0x100] sm:$0xff]  ;;  %v322_v55 = vld [vmem:[%s3339_s5 + $0x318] sm:$0xff] }
  0x50   :  { %566 = vmatprep.subr.mxu1 %v280_v34  ;;  %178 = vmatpush1.msra.mxu0 %v108_v35  ;;  %v248_v50 = vld [vmem:[%s3339_s5 + $0xc8] sm:$0xff]  ;;  %v247_v52 = vld [vmem:[%s3339_s5 + $0xc0] sm:$0xff]  ;;  %v321_v57 = vld [vmem:[%s3339_s5 + $0x310] sm:$0xff] }
  0x51   :  { %567 = vmatpush1.msra.mxu1 %v279_v36  ;;  %179 = vmatprep.subr.mxu0 %v107_v37  ;;  %v240_v54 = vld [vmem:[%s3339_s5 + $0x88] sm:$0xff]  ;;  %v239_v56 = vld [vmem:[%s3339_s5 + $0x80] sm:$0xff]  ;;  %v314_v59 = vld [vmem:[%s3339_s5 + $0x2d8] sm:$0xff] }
  0x52   :  { %568 = vmatprep.subr.mxu1 %v272_v38  ;;  %180 = vmatpush1.msra.mxu0 %v106_v39  ;;  %v232_v58 = vld [vmem:[%s3339_s5 + $0x48] sm:$0xff]  ;;  %v231_v60 = vld [vmem:[%s3339_s5 + $0x40] sm:$0xff]  ;;  %v313_v61 = vld [vmem:[%s3339_s5 + $0x2d0] sm:$0xff] }
  0x53   :  { %569 = vmatpush1.msra.mxu1 %v271_v40  ;;  %621 = vmatprep.subr.mxu0 %v346_v42  ;;  %v224_v62 = vld [vmem:[%s3339_s5 + $0x8] sm:$0xff]  ;;  %v306_v63 = vld [vmem:[%s3339_s5 + $0x298] sm:$0xff]  ;;  %v223_v0 = vld [vmem:[%s3339_s5] sm:$0xff] }
  0x54   :  { %570 = vmatprep.subr.mxu1 %v264_v41  ;;  %1509 = vmatmul.mubr.msk.f32.vlgmr.msra.gmra.mxu0 %vm138_vm1, %v105_v43  ;;  %v305_v1 = vld [vmem:[%s3339_s5 + $0x290] sm:$0xff]  ;;  %v464_v2 = vld [vmem:[%s3339_s5 + $0x788] sm:$0x7]  ;;  %v298_v3 = vld [vmem:[%s3339_s5 + $0x258] sm:$0xff] }
  0x55   :  { %571 = vmatpush1.msra.mxu1 %v263_v44  ;;  %622 = vmatpush1.msra.mxu0 %v345_v45  ;;  %v463_v4 = vld [vmem:[%s3339_s5 + $0x780] sm:$0x7]  ;;  %v297_v5 = vld [vmem:[%s3339_s5 + $0x250] sm:$0xff]  ;;  %v456_v6 = vld [vmem:[%s3339_s5 + $0x748] sm:$0xff] }
  0x56   :  { %572 = vmatprep.subr.mxu1 %v256_v46  ;;  %623 = vmatprep.subr.mxu0 %v338_v47  ;;  %v290_v7 = vld [vmem:[%s3339_s5 + $0x218] sm:$0xff]  ;;  %v455_v8 = vld [vmem:[%s3339_s5 + $0x740] sm:$0xff]  ;;  %v289_v9 = vld [vmem:[%s3339_s5 + $0x210] sm:$0xff] }
  0x57   :  { %573 = vmatpush1.msra.mxu1 %v255_v48  ;;  %624 = vmatpush1.msra.mxu0 %v337_v49  ;;  %v448_v10 = vld [vmem:[%s3339_s5 + $0x708] sm:$0xff]  ;;  %v282_v11 = vld [vmem:[%s3339_s5 + $0x1d8] sm:$0xff]  ;;  %v447_v12 = vld [vmem:[%s3339_s5 + $0x700] sm:$0xff] }
  0x58   :  { %574 = vmatprep.subr.mxu1 %v248_v50  ;;  %625 = vmatprep.subr.mxu0 %v330_v51  ;;  %v281_v13 = vld [vmem:[%s3339_s5 + $0x1d0] sm:$0xff]  ;;  %v440_v14 = vld [vmem:[%s3339_s5 + $0x6c8] sm:$0xff]  ;;  %v274_v15 = vld [vmem:[%s3339_s5 + $0x198] sm:$0xff] }
  0x59   :  { %575 = vmatpush1.msra.mxu1 %v247_v52  ;;  %626 = vmatpush1.msra.mxu0 %v329_v53  ;;  %v439_v16 = vld [vmem:[%s3339_s5 + $0x6c0] sm:$0xff]  ;;  %v273_v17 = vld [vmem:[%s3339_s5 + $0x190] sm:$0xff]  ;;  %v432_v18 = vld [vmem:[%s3339_s5 + $0x688] sm:$0xff] }
  0x5a   :  { %576 = vmatprep.subr.mxu1 %v240_v54  ;;  %627 = vmatprep.subr.mxu0 %v322_v55  ;;  %v266_v19 = vld [vmem:[%s3339_s5 + $0x158] sm:$0xff]  ;;  %v431_v20 = vld [vmem:[%s3339_s5 + $0x680] sm:$0xff]  ;;  %v265_v21 = vld [vmem:[%s3339_s5 + $0x150] sm:$0xff] }
  0x5b   :  { %577 = vmatpush1.msra.mxu1 %v239_v56  ;;  %628 = vmatpush1.msra.mxu0 %v321_v57  ;;  %v424_v22 = vld [vmem:[%s3339_s5 + $0x648] sm:$0xff]  ;;  %v258_v23 = vld [vmem:[%s3339_s5 + $0x118] sm:$0xff]  ;;  %v423_v24 = vld [vmem:[%s3339_s5 + $0x640] sm:$0xff] }
  0x5c   :  { %578 = vmatprep.subr.mxu1 %v232_v58  ;;  %629 = vmatprep.subr.mxu0 %v314_v59  ;;  %v257_v25 = vld [vmem:[%s3339_s5 + $0x110] sm:$0xff]  ;;  %v416_v26 = vld [vmem:[%s3339_s5 + $0x608] sm:$0xff]  ;;  %v250_v27 = vld [vmem:[%s3339_s5 + $0xd8] sm:$0xff] }
  0x5d   :  { %579 = vmatpush1.msra.mxu1 %v231_v60  ;;  %630 = vmatpush1.msra.mxu0 %v313_v61  ;;  %v415_v28 = vld [vmem:[%s3339_s5 + $0x600] sm:$0xff]  ;;  %v249_v29 = vld [vmem:[%s3339_s5 + $0xd0] sm:$0xff]  ;;  %v408_v30 = vld [vmem:[%s3339_s5 + $0x5c8] sm:$0xff] }
  0x5e   :  { %580 = vmatprep.subr.mxu1 %v224_v62  ;;  %631 = vmatprep.subr.mxu0 %v306_v63  ;;  %v242_v31 = vld [vmem:[%s3339_s5 + $0x98] sm:$0xff]  ;;  %v407_v32 = vld [vmem:[%s3339_s5 + $0x5c0] sm:$0xff]  ;;  %v241_v33 = vld [vmem:[%s3339_s5 + $0x90] sm:$0xff] }
  0x5f   :  { %581 = vmatpush1.msra.mxu1 %v223_v0  ;;  %632 = vmatpush1.msra.mxu0 %v305_v1  ;;  %v400_v34 = vld [vmem:[%s3339_s5 + $0x588] sm:$0xff]  ;;  %v234_v35 = vld [vmem:[%s3339_s5 + $0x58] sm:$0xff]  ;;  %v399_v36 = vld [vmem:[%s3339_s5 + $0x580] sm:$0xff] }
  0x60   :  { %1511 = vmatprep.subr.msk.mxu1 %vm142_vm0, %v464_v2  ;;  %633 = vmatprep.subr.mxu0 %v298_v3  ;;  %v233_v37 = vld [vmem:[%s3339_s5 + $0x50] sm:$0xff]  ;;  %v392_v38 = vld [vmem:[%s3339_s5 + $0x548] sm:$0xff]  ;;  %v226_v39 = vld [vmem:[%s3339_s5 + $0x18] sm:$0xff] }
  0x61   :  { %1512 = vmatpush2.msk.msra.mxu1 %vm142_vm0, %v463_v4  ;;  %634 = vmatpush1.msra.mxu0 %v297_v5  ;;  %v391_v40 = vld [vmem:[%s3339_s5 + $0x540] sm:$0xff]  ;;  %v225_v41 = vld [vmem:[%s3339_s5 + $0x10] sm:$0xff]  ;;  %v384_v42 = vld [vmem:[%s3339_s5 + $0x508] sm:$0xff] }
  0x62   :  { %586 = vmatprep.subr.mxu1 %v456_v6  ;;  %635 = vmatprep.subr.mxu0 %v290_v7  ;;  %v466_v43 = vld [vmem:[%s3339_s5 + $0x798] sm:$0x7]  ;;  %v383_v44 = vld [vmem:[%s3339_s5 + $0x500] sm:$0xff]  ;;  %v465_v45 = vld [vmem:[%s3339_s5 + $0x790] sm:$0x7] }
  0x63   :  { %587 = vmatpush2.msra.mxu1 %v455_v8  ;;  %636 = vmatpush1.msra.mxu0 %v289_v9  ;;  %v376_v46 = vld [vmem:[%s3339_s5 + $0x4c8] sm:$0xff]  ;;  %v458_v47 = vld [vmem:[%s3339_s5 + $0x758] sm:$0xff]  ;;  %v375_v48 = vld [vmem:[%s3339_s5 + $0x4c0] sm:$0xff] }
  0x64   :  { %588 = vmatprep.subr.mxu1 %v448_v10  ;;  %637 = vmatprep.subr.mxu0 %v282_v11  ;;  %v457_v49 = vld [vmem:[%s3339_s5 + $0x750] sm:$0xff]  ;;  %v368_v50 = vld [vmem:[%s3339_s5 + $0x488] sm:$0xff]  ;;  %v450_v51 = vld [vmem:[%s3339_s5 + $0x718] sm:$0xff] }
  0x65   :  { %589 = vmatpush2.msra.mxu1 %v447_v12  ;;  %638 = vmatpush1.msra.mxu0 %v281_v13  ;;  %v367_v52 = vld [vmem:[%s3339_s5 + $0x480] sm:$0xff]  ;;  %v449_v53 = vld [vmem:[%s3339_s5 + $0x710] sm:$0xff]  ;;  %v360_v54 = vld [vmem:[%s3339_s5 + $0x448] sm:$0xff] }
  0x66   :  { %590 = vmatprep.subr.mxu1 %v440_v14  ;;  %639 = vmatprep.subr.mxu0 %v274_v15  ;;  %v2321_v55 = vld.sshfl [vmem:[%s3335_s1] sm:$0x33 pattern:$0x76325410]  ;;  %v442_v56 = vld [vmem:[%s3339_s5 + $0x6d8] sm:$0xff]  ;;  %v441_v58 = vld [vmem:[%s3339_s5 + $0x6d0] sm:$0xff] }
  0x67   :  { %591 = vmatpush2.msra.mxu1 %v439_v16  ;;  %640 = vmatpush1.msra.mxu0 %v273_v17  ;;  %v359_v57 = vld [vmem:[%s3339_s5 + $0x440] sm:$0xff]  ;;  %v352_v59 = vld [vmem:[%s3339_s5 + $0x408] sm:$0xff]  ;;  %v434_v60 = vld [vmem:[%s3339_s5 + $0x698] sm:$0xff]  ;;  %v2343_v62 = vcombine.high %v2321_v55, %v2321_v55 }
  0x68   :  { %592 = vmatprep.subr.mxu1 %v432_v18  ;;  %641 = vmatprep.subr.mxu0 %v266_v19  ;;  %v351_v61 = vld [vmem:[%s3339_s5 + $0x400] sm:$0xff]  ;;  %v433_v63 = vld [vmem:[%s3339_s5 + $0x690] sm:$0xff]  ;;  %v426_v0 = vld [vmem:[%s3339_s5 + $0x658] sm:$0xff] }
  0x69   :  { %593 = vmatpush2.msra.mxu1 %v431_v20  ;;  %642 = vmatpush1.msra.mxu0 %v265_v21  ;;  %v348_v1 = vld [vmem:[%s3339_s5 + $0x3e8] sm:$0xff]  ;;  %v425_v2 = vld [vmem:[%s3339_s5 + $0x650] sm:$0xff]  ;;  %v347_v3 = vld [vmem:[%s3339_s5 + $0x3e0] sm:$0xff] }
  0x6a   :  { %594 = vmatprep.subr.mxu1 %v424_v22  ;;  %643 = vmatprep.subr.mxu0 %v258_v23  ;;  %v418_v4 = vld [vmem:[%s3339_s5 + $0x618] sm:$0xff]  ;;  %v340_v5 = vld [vmem:[%s3339_s5 + $0x3a8] sm:$0xff]  ;;  %v417_v6 = vld [vmem:[%s3339_s5 + $0x610] sm:$0xff] }
  0x6b   :  { %595 = vmatpush2.msra.mxu1 %v423_v24  ;;  %644 = vmatpush1.msra.mxu0 %v257_v25  ;;  %v339_v7 = vld [vmem:[%s3339_s5 + $0x3a0] sm:$0xff]  ;;  %v410_v8 = vld [vmem:[%s3339_s5 + $0x5d8] sm:$0xff]  ;;  %v332_v9 = vld [vmem:[%s3339_s5 + $0x368] sm:$0xff] }
  0x6c   :  { %596 = vmatprep.subr.mxu1 %v416_v26  ;;  %645 = vmatprep.subr.mxu0 %v250_v27  ;;  %v409_v10 = vld [vmem:[%s3339_s5 + $0x5d0] sm:$0xff]  ;;  %v331_v11 = vld [vmem:[%s3339_s5 + $0x360] sm:$0xff]  ;;  %v402_v12 = vld [vmem:[%s3339_s5 + $0x598] sm:$0xff] }
  0x6d   :  { %597 = vmatpush2.msra.mxu1 %v415_v28  ;;  %646 = vmatpush1.msra.mxu0 %v249_v29  ;;  %v324_v13 = vld [vmem:[%s3339_s5 + $0x328] sm:$0xff]  ;;  %v401_v14 = vld [vmem:[%s3339_s5 + $0x590] sm:$0xff]  ;;  %v323_v15 = vld [vmem:[%s3339_s5 + $0x320] sm:$0xff] }
  0x6e   :  { %598 = vmatprep.subr.mxu1 %v408_v30  ;;  %647 = vmatprep.subr.mxu0 %v242_v31  ;;  %v394_v16 = vld [vmem:[%s3339_s5 + $0x558] sm:$0xff]  ;;  %v316_v17 = vld [vmem:[%s3339_s5 + $0x2e8] sm:$0xff]  ;;  %v393_v18 = vld [vmem:[%s3339_s5 + $0x550] sm:$0xff] }
  0x6f   :  { %599 = vmatpush2.msra.mxu1 %v407_v32  ;;  %648 = vmatpush1.msra.mxu0 %v241_v33  ;;  %v315_v19 = vld [vmem:[%s3339_s5 + $0x2e0] sm:$0xff]  ;;  %v386_v20 = vld [vmem:[%s3339_s5 + $0x518] sm:$0xff]  ;;  %v308_v21 = vld [vmem:[%s3339_s5 + $0x2a8] sm:$0xff] }
  0x70   :  { %600 = vmatprep.subr.mxu1 %v400_v34  ;;  %649 = vmatprep.subr.mxu0 %v234_v35  ;;  %v385_v22 = vld [vmem:[%s3339_s5 + $0x510] sm:$0xff]  ;;  %v307_v23 = vld [vmem:[%s3339_s5 + $0x2a0] sm:$0xff]  ;;  %v378_v24 = vld [vmem:[%s3339_s5 + $0x4d8] sm:$0xff] }
  0x71   :  { %601 = vmatpush2.msra.mxu1 %v399_v36  ;;  %650 = vmatpush1.msra.mxu0 %v233_v37  ;;  %v300_v25 = vld [vmem:[%s3339_s5 + $0x268] sm:$0xff]  ;;  %v377_v26 = vld [vmem:[%s3339_s5 + $0x4d0] sm:$0xff]  ;;  %v299_v27 = vld [vmem:[%s3339_s5 + $0x260] sm:$0xff] }
  0x72   :  { %602 = vmatprep.subr.mxu1 %v392_v38  ;;  %651 = vmatprep.subr.mxu0 %v226_v39  ;;  %v370_v28 = vld [vmem:[%s3339_s5 + $0x498] sm:$0xff]  ;;  %v292_v29 = vld [vmem:[%s3339_s5 + $0x228] sm:$0xff]  ;;  %v369_v30 = vld [vmem:[%s3339_s5 + $0x490] sm:$0xff] }
  0x73   :  { %603 = vmatpush2.msra.mxu1 %v391_v40  ;;  %652 = vmatpush1.msra.mxu0 %v225_v41  ;;  %v291_v31 = vld [vmem:[%s3339_s5 + $0x220] sm:$0xff]  ;;  %v362_v32 = vld [vmem:[%s3339_s5 + $0x458] sm:$0xff]  ;;  %v284_v33 = vld [vmem:[%s3339_s5 + $0x1e8] sm:$0xff] }
  0x74   :  { %604 = vmatprep.subr.mxu1 %v384_v42  ;;  %1514 = vmatprep.subr.msk.mxu0 %vm142_vm0, %v466_v43  ;;  %v361_v34 = vld [vmem:[%s3339_s5 + $0x450] sm:$0xff]  ;;  %v283_v35 = vld [vmem:[%s3339_s5 + $0x1e0] sm:$0xff]  ;;  %v354_v36 = vld [vmem:[%s3339_s5 + $0x418] sm:$0xff] }
  0x75   :  { %605 = vmatpush2.msra.mxu1 %v383_v44  ;;  %1515 = vmatpush2.msk.msra.mxu0 %vm142_vm0, %v465_v45  ;;  %v276_v37 = vld [vmem:[%s3339_s5 + $0x1a8] sm:$0xff]  ;;  %v353_v38 = vld [vmem:[%s3339_s5 + $0x410] sm:$0xff]  ;;  %v275_v39 = vld [vmem:[%s3339_s5 + $0x1a0] sm:$0xff] }
  0x76   :  { %606 = vmatprep.subr.mxu1 %v376_v46  ;;  %657 = vmatprep.subr.mxu0 %v458_v47  ;;  %v268_v40 = vld [vmem:[%s3339_s5 + $0x168] sm:$0xff]  ;;  %v350_v41 = vld [vmem:[%s3339_s5 + $0x3f8] sm:$0xff]  ;;  %v267_v42 = vld [vmem:[%s3339_s5 + $0x160] sm:$0xff] }
  0x77   :  { %607 = vmatpush2.msra.mxu1 %v375_v48  ;;  %658 = vmatpush2.msra.mxu0 %v457_v49  ;;  %v349_v43 = vld [vmem:[%s3339_s5 + $0x3f0] sm:$0xff]  ;;  %v260_v44 = vld [vmem:[%s3339_s5 + $0x128] sm:$0xff]  ;;  %v342_v45 = vld [vmem:[%s3339_s5 + $0x3b8] sm:$0xff] }
  0x78   :  { %608 = vmatprep.subr.mxu1 %v368_v50  ;;  %659 = vmatprep.subr.mxu0 %v450_v51  ;;  %v259_v46 = vld [vmem:[%s3339_s5 + $0x120] sm:$0xff]  ;;  %v341_v47 = vld [vmem:[%s3339_s5 + $0x3b0] sm:$0xff]  ;;  %v252_v48 = vld [vmem:[%s3339_s5 + $0xe8] sm:$0xff] }
  0x79   :  { %609 = vmatpush2.msra.mxu1 %v367_v52  ;;  %660 = vmatpush2.msra.mxu0 %v449_v53  ;;  %v334_v49 = vld [vmem:[%s3339_s5 + $0x378] sm:$0xff]  ;;  %v251_v50 = vld [vmem:[%s3339_s5 + $0xe0] sm:$0xff]  ;;  %v333_v51 = vld [vmem:[%s3339_s5 + $0x370] sm:$0xff] }
  0x7a   :  { %610 = vmatprep.subr.mxu1 %v360_v54  ;;  %661 = vmatprep.subr.mxu0 %v442_v56  ;;  %v244_v52 = vld [vmem:[%s3339_s5 + $0xa8] sm:$0xff]  ;;  %v326_v53 = vld [vmem:[%s3339_s5 + $0x338] sm:$0xff]  ;;  %v243_v54 = vld [vmem:[%s3339_s5 + $0xa0] sm:$0xff] }
  0x7b   :  { %611 = vmatpush2.msra.mxu1 %v359_v57  ;;  %662 = vmatpush2.msra.mxu0 %v441_v58  ;;  %v325_v56 = vld [vmem:[%s3339_s5 + $0x330] sm:$0xff]  ;;  %v236_v57 = vld [vmem:[%s3339_s5 + $0x68] sm:$0xff]  ;;  %v318_v58 = vld [vmem:[%s3339_s5 + $0x2f8] sm:$0xff] }
  0x7c   :  { %612 = vmatprep.subr.mxu1 %v352_v59  ;;  %663 = vmatprep.subr.mxu0 %v434_v60  ;;  %v235_v59 = vld [vmem:[%s3339_s5 + $0x60] sm:$0xff]  ;;  %v317_v60 = vld [vmem:[%s3339_s5 + $0x2f0] sm:$0xff] }
  0x7d   :  { %613 = vmatpush2.msra.mxu1 %v351_v61  ;;  %1513 = vmatprep.mubr.msk.f32.mxu1 %vm523_vm2, %v2343_v62  ;;  %v228_v61 = vld [vmem:[%s3339_s5 + $0x28] sm:$0xff] }
  0x7e   :  { %664 = vmatpush2.msra.mxu0 %v433_v63  ;;  %615 = vmatmul.mubr.f32.vlgmr.msra.gmra.mxu1 %v2321_v55  ;;  %v310_v63 = vld [vmem:[%s3339_s5 + $0x2b8] sm:$0xff] }
  0x7f   :  { %665 = vmatprep.subr.mxu0 %v426_v0  ;;  %692 = vmatprep.subr.mxu1 %v348_v1  ;;  %v227_v0 = vld [vmem:[%s3339_s5 + $0x20] sm:$0xff]  ;;  %v309_v1 = vld [vmem:[%s3339_s5 + $0x2b0] sm:$0xff] }
  0x80   :  { %666 = vmatpush2.msra.mxu0 %v425_v2  ;;  %693 = vmatpush1.msra.mxu1 %v347_v3  ;;  %v468_v2 = vld [vmem:[%s3339_s5 + $0x7a8] sm:$0x7]  ;;  %v302_v3 = vld [vmem:[%s3339_s5 + $0x278] sm:$0xff] }
  0x81   :  { %667 = vmatprep.subr.mxu0 %v418_v4  ;;  %694 = vmatprep.subr.mxu1 %v340_v5  ;;  %v467_v4 = vld [vmem:[%s3339_s5 + $0x7a0] sm:$0x7]  ;;  %v301_v5 = vld [vmem:[%s3339_s5 + $0x270] sm:$0xff] }
  0x82   :  { %668 = vmatpush2.msra.mxu0 %v417_v6  ;;  %695 = vmatpush1.msra.mxu1 %v339_v7  ;;  %v460_v6 = vld [vmem:[%s3339_s5 + $0x768] sm:$0xff]  ;;  %v294_v7 = vld [vmem:[%s3339_s5 + $0x238] sm:$0xff] }
  0x83   :  { %669 = vmatprep.subr.mxu0 %v410_v8  ;;  %696 = vmatprep.subr.mxu1 %v332_v9  ;;  %v459_v8 = vld [vmem:[%s3339_s5 + $0x760] sm:$0xff]  ;;  %v293_v9 = vld [vmem:[%s3339_s5 + $0x230] sm:$0xff] }
  0x84   :  { %670 = vmatpush2.msra.mxu0 %v409_v10  ;;  %697 = vmatpush1.msra.mxu1 %v331_v11  ;;  %v452_v10 = vld [vmem:[%s3339_s5 + $0x728] sm:$0xff]  ;;  %v286_v11 = vld [vmem:[%s3339_s5 + $0x1f8] sm:$0xff] }
  0x85   :  { %671 = vmatprep.subr.mxu0 %v402_v12  ;;  %698 = vmatprep.subr.mxu1 %v324_v13  ;;  %v451_v12 = vld [vmem:[%s3339_s5 + $0x720] sm:$0xff]  ;;  %v285_v13 = vld [vmem:[%s3339_s5 + $0x1f0] sm:$0xff] }
  0x86   :  { %672 = vmatpush2.msra.mxu0 %v401_v14  ;;  %699 = vmatpush1.msra.mxu1 %v323_v15  ;;  %v444_v14 = vld [vmem:[%s3339_s5 + $0x6e8] sm:$0xff]  ;;  %v278_v15 = vld [vmem:[%s3339_s5 + $0x1b8] sm:$0xff] }
  0x87   :  { %673 = vmatprep.subr.mxu0 %v394_v16  ;;  %700 = vmatprep.subr.mxu1 %v316_v17  ;;  %v443_v16 = vld [vmem:[%s3339_s5 + $0x6e0] sm:$0xff]  ;;  %v277_v17 = vld [vmem:[%s3339_s5 + $0x1b0] sm:$0xff] }
  0x88   :  { %674 = vmatpush2.msra.mxu0 %v393_v18  ;;  %701 = vmatpush1.msra.mxu1 %v315_v19  ;;  %v436_v18 = vld [vmem:[%s3339_s5 + $0x6a8] sm:$0xff]  ;;  %v270_v19 = vld [vmem:[%s3339_s5 + $0x178] sm:$0xff] }
  0x89   :  { %675 = vmatprep.subr.mxu0 %v386_v20  ;;  %702 = vmatprep.subr.mxu1 %v308_v21  ;;  %v435_v20 = vld [vmem:[%s3339_s5 + $0x6a0] sm:$0xff]  ;;  %v269_v21 = vld [vmem:[%s3339_s5 + $0x170] sm:$0xff] }
  0x8a   :  { %676 = vmatpush2.msra.mxu0 %v385_v22  ;;  %703 = vmatpush1.msra.mxu1 %v307_v23  ;;  %v428_v22 = vld [vmem:[%s3339_s5 + $0x668] sm:$0xff]  ;;  %v262_v23 = vld [vmem:[%s3339_s5 + $0x138] sm:$0xff] }
  0x8b   :  { %677 = vmatprep.subr.mxu0 %v378_v24  ;;  %704 = vmatprep.subr.mxu1 %v300_v25  ;;  %v427_v24 = vld [vmem:[%s3339_s5 + $0x660] sm:$0xff]  ;;  %v261_v25 = vld [vmem:[%s3339_s5 + $0x130] sm:$0xff] }
  0x8c   :  { %678 = vmatpush2.msra.mxu0 %v377_v26  ;;  %705 = vmatpush1.msra.mxu1 %v299_v27  ;;  %v420_v26 = vld [vmem:[%s3339_s5 + $0x628] sm:$0xff]  ;;  %v254_v27 = vld [vmem:[%s3339_s5 + $0xf8] sm:$0xff] }
  0x8d   :  { %679 = vmatprep.subr.mxu0 %v370_v28  ;;  %706 = vmatprep.subr.mxu1 %v292_v29  ;;  %v419_v28 = vld [vmem:[%s3339_s5 + $0x620] sm:$0xff]  ;;  %v253_v29 = vld [vmem:[%s3339_s5 + $0xf0] sm:$0xff] }
  0x8e   :  { %680 = vmatpush2.msra.mxu0 %v369_v30  ;;  %707 = vmatpush1.msra.mxu1 %v291_v31  ;;  %v412_v30 = vld [vmem:[%s3339_s5 + $0x5e8] sm:$0xff]  ;;  %v246_v31 = vld [vmem:[%s3339_s5 + $0xb8] sm:$0xff] }
  0x8f   :  { %681 = vmatprep.subr.mxu0 %v362_v32  ;;  %708 = vmatprep.subr.mxu1 %v284_v33  ;;  %v411_v32 = vld [vmem:[%s3339_s5 + $0x5e0] sm:$0xff]  ;;  %v245_v33 = vld [vmem:[%s3339_s5 + $0xb0] sm:$0xff] }
  0x90   :  { %682 = vmatpush2.msra.mxu0 %v361_v34  ;;  %709 = vmatpush1.msra.mxu1 %v283_v35  ;;  %v404_v34 = vld [vmem:[%s3339_s5 + $0x5a8] sm:$0xff]  ;;  %v238_v35 = vld [vmem:[%s3339_s5 + $0x78] sm:$0xff] }
  0x91   :  { %683 = vmatprep.subr.mxu0 %v354_v36  ;;  %710 = vmatprep.subr.mxu1 %v276_v37  ;;  %v403_v36 = vld [vmem:[%s3339_s5 + $0x5a0] sm:$0xff]  ;;  %v237_v37 = vld [vmem:[%s3339_s5 + $0x70] sm:$0xff] }
  0x92   :  { %684 = vmatpush2.msra.mxu0 %v353_v38  ;;  %1516 = vmatprep.mubr.msk.f32.mxu0 %vm523_vm2, %v2343_v62  ;;  %v396_v38 = vld [vmem:[%s3339_s5 + $0x568] sm:$0xff] }
  0x93   :  { %711 = vmatpush1.msra.mxu1 %v275_v39  ;;  %686 = vmatmul.mubr.f32.vlgmr.msra.gmra.mxu0 %v2321_v55  ;;  %v230_v39 = vld [vmem:[%s3339_s5 + $0x38] sm:$0xff] }
  0x94   :  { %712 = vmatprep.subr.mxu1 %v268_v40  ;;  %763 = vmatprep.subr.mxu0 %v350_v41  ;;  %v395_v40 = vld [vmem:[%s3339_s5 + $0x560] sm:$0xff]  ;;  %v229_v41 = vld [vmem:[%s3339_s5 + $0x30] sm:$0xff] }
  0x95   :  { %713 = vmatpush1.msra.mxu1 %v267_v42  ;;  %764 = vmatpush1.msra.mxu0 %v349_v43  ;;  %v388_v42 = vld [vmem:[%s3339_s5 + $0x528] sm:$0xff]  ;;  %v470_v43 = vld [vmem:[%s3339_s5 + $0x7b8] sm:$0x7] }
  0x96   :  { %714 = vmatprep.subr.mxu1 %v260_v44  ;;  %765 = vmatprep.subr.mxu0 %v342_v45  ;;  %v387_v44 = vld [vmem:[%s3339_s5 + $0x520] sm:$0xff]  ;;  %v469_v45 = vld [vmem:[%s3339_s5 + $0x7b0] sm:$0x7] }
  0x97   :  { %715 = vmatpush1.msra.mxu1 %v259_v46  ;;  %766 = vmatpush1.msra.mxu0 %v341_v47  ;;  %v380_v46 = vld [vmem:[%s3339_s5 + $0x4e8] sm:$0xff]  ;;  %v462_v47 = vld [vmem:[%s3339_s5 + $0x778] sm:$0xff] }
  0x98   :  { %716 = vmatprep.subr.mxu1 %v252_v48  ;;  %767 = vmatprep.subr.mxu0 %v334_v49  ;;  %v379_v48 = vld [vmem:[%s3339_s5 + $0x4e0] sm:$0xff]  ;;  %v461_v49 = vld [vmem:[%s3339_s5 + $0x770] sm:$0xff] }
  0x99   :  { %717 = vmatpush1.msra.mxu1 %v251_v50  ;;  %768 = vmatpush1.msra.mxu0 %v333_v51  ;;  %v372_v50 = vld [vmem:[%s3339_s5 + $0x4a8] sm:$0xff]  ;;  %v454_v51 = vld [vmem:[%s3339_s5 + $0x738] sm:$0xff] }
  0x9a   :  { %718 = vmatprep.subr.mxu1 %v244_v52  ;;  %769 = vmatprep.subr.mxu0 %v326_v53  ;;  %v371_v52 = vld [vmem:[%s3339_s5 + $0x4a0] sm:$0xff]  ;;  %v453_v53 = vld [vmem:[%s3339_s5 + $0x730] sm:$0xff] }
  0x9b   :  { %719 = vmatpush1.msra.mxu1 %v243_v54  ;;  %770 = vmatpush1.msra.mxu0 %v325_v56  ;;  %v364_v54 = vld [vmem:[%s3339_s5 + $0x468] sm:$0xff]  ;;  %v446_v56 = vld [vmem:[%s3339_s5 + $0x6f8] sm:$0xff] }
  0x9c   :  { %720 = vmatprep.subr.mxu1 %v236_v57  ;;  %771 = vmatprep.subr.mxu0 %v318_v58  ;;  %v363_v57 = vld [vmem:[%s3339_s5 + $0x460] sm:$0xff]  ;;  %v445_v58 = vld [vmem:[%s3339_s5 + $0x6f0] sm:$0xff] }
  0x9d   :  { %721 = vmatpush1.msra.mxu1 %v235_v59  ;;  %772 = vmatpush1.msra.mxu0 %v317_v60  ;;  %v356_v59 = vld [vmem:[%s3339_s5 + $0x428] sm:$0xff]  ;;  %v438_v60 = vld [vmem:[%s3339_s5 + $0x6b8] sm:$0xff] }
  0x9e   :  { %722 = vmatprep.subr.mxu1 %v228_v61  ;;  %773 = vmatprep.subr.mxu0 %v310_v63  ;;  %v355_v61 = vld [vmem:[%s3339_s5 + $0x420] sm:$0xff]  ;;  %v437_v63 = vld [vmem:[%s3339_s5 + $0x6b0] sm:$0xff] }
  0x9f   :  { %723 = vmatpush1.msra.mxu1 %v227_v0  ;;  %774 = vmatpush1.msra.mxu0 %v309_v1  ;;  %v430_v0 = vld [vmem:[%s3339_s5 + $0x678] sm:$0xff]  ;;  %v429_v1 = vld [vmem:[%s3339_s5 + $0x670] sm:$0xff] }
  0xa0   :  { %1517 = vmatprep.subr.msk.mxu1 %vm142_vm0, %v468_v2  ;;  %775 = vmatprep.subr.mxu0 %v302_v3  ;;  %v422_v2 = vld [vmem:[%s3339_s5 + $0x638] sm:$0xff] }
  0xa1   :  { %1518 = vmatpush2.msk.msra.mxu1 %vm142_vm0, %v467_v4  ;;  %776 = vmatpush1.msra.mxu0 %v301_v5  ;;  %v964_v3 = vld [vmem:[%s3342_s8 + $0xf8] sm:$0xff]  ;;  %v421_v4 = vld [vmem:[%s3339_s5 + $0x630] sm:$0xff] }
  0xa2   :  { %728 = vmatprep.subr.mxu1 %v460_v6  ;;  %777 = vmatprep.subr.mxu0 %v294_v7  ;;  %v948_v5 = vld [vmem:[%s3342_s8 + $0x78] sm:$0xff]  ;;  %v963_v7 = vld [vmem:[%s3342_s8 + $0xf0] sm:$0xff] }
  0xa3   :  { %729 = vmatpush2.msra.mxu1 %v459_v8  ;;  %778 = vmatpush1.msra.mxu0 %v293_v9  ;;  %v414_v6 = vld [vmem:[%s3339_s5 + $0x5f8] sm:$0xff]  ;;  %v413_v8 = vld [vmem:[%s3339_s5 + $0x5f0] sm:$0xff] }
  0xa4   :  { %730 = vmatprep.subr.mxu1 %v452_v10  ;;  %779 = vmatprep.subr.mxu0 %v286_v11  ;;  %v947_v9 = vld [vmem:[%s3342_s8 + $0x70] sm:$0xff]  ;;  %v406_v10 = vld [vmem:[%s3339_s5 + $0x5b8] sm:$0xff] }
  0xa5   :  { %731 = vmatpush2.msra.mxu1 %v451_v12  ;;  %780 = vmatpush1.msra.mxu0 %v285_v13  ;;  %v405_v11 = vld [vmem:[%s3339_s5 + $0x5b0] sm:$0xff]  ;;  %v946_v12 = vld [vmem:[%s3342_s8 + $0x68] sm:$0xff]  ;;  %v398_v13 = vld [vmem:[%s3339_s5 + $0x578] sm:$0xff] }
  0xa6   :  { %732 = vmatprep.subr.mxu1 %v444_v14  ;;  %781 = vmatprep.subr.mxu0 %v278_v15  ;;  %v961_v14 = vld [vmem:[%s3342_s8 + $0xe0] sm:$0xff]  ;;  %v397_v15 = vld [vmem:[%s3339_s5 + $0x570] sm:$0xff] }
  0xa7   :  { %733 = vmatpush2.msra.mxu1 %v443_v16  ;;  %782 = vmatpush1.msra.mxu0 %v277_v17  ;;  %v945_v16 = vld [vmem:[%s3342_s8 + $0x60] sm:$0xff]  ;;  %v390_v17 = vld [vmem:[%s3339_s5 + $0x538] sm:$0xff] }
  0xa8   :  { %734 = vmatprep.subr.mxu1 %v436_v18  ;;  %783 = vmatprep.subr.mxu0 %v270_v19  ;;  %v960_v18 = vld [vmem:[%s3342_s8 + $0xd8] sm:$0xff]  ;;  %v389_v19 = vld [vmem:[%s3339_s5 + $0x530] sm:$0xff] }
  0xa9   :  { %735 = vmatpush2.msra.mxu1 %v435_v20  ;;  %784 = vmatpush1.msra.mxu0 %v269_v21  ;;  %v944_v20 = vld [vmem:[%s3342_s8 + $0x58] sm:$0xff] }
  0xaa   :  { %736 = vmatprep.subr.mxu1 %v428_v22  ;;  %785 = vmatprep.subr.mxu0 %v262_v23  ;;  %v382_v21 = vld [vmem:[%s3339_s5 + $0x4f8] sm:$0xff]  ;;  %v959_v22 = vld [vmem:[%s3342_s8 + $0xd0] sm:$0xff] }
  0xab   :  { %737 = vmatpush2.msra.mxu1 %v427_v24  ;;  %786 = vmatpush1.msra.mxu0 %v261_v25  ;;  %v381_v23 = vld [vmem:[%s3339_s5 + $0x4f0] sm:$0xff]  ;;  %v374_v25 = vld [vmem:[%s3339_s5 + $0x4b8] sm:$0xff] }
  0xac   :  { %738 = vmatprep.subr.mxu1 %v420_v26  ;;  %787 = vmatprep.subr.mxu0 %v254_v27  ;;  %v943_v24 = vld [vmem:[%s3342_s8 + $0x50] sm:$0xff]  ;;  %v958_v26 = vld [vmem:[%s3342_s8 + $0xc8] sm:$0xff] }
  0xad   :  { %739 = vmatpush2.msra.mxu1 %v419_v28  ;;  %788 = vmatpush1.msra.mxu0 %v253_v29  ;;  %v373_v27 = vld [vmem:[%s3339_s5 + $0x4b0] sm:$0xff]  ;;  %v942_v28 = vld [vmem:[%s3342_s8 + $0x48] sm:$0xff]  ;;  %v366_v29 = vld [vmem:[%s3339_s5 + $0x478] sm:$0xff] }
  0xae   :  { %740 = vmatprep.subr.mxu1 %v412_v30  ;;  %789 = vmatprep.subr.mxu0 %v246_v31  ;;  %v957_v30 = vld [vmem:[%s3342_s8 + $0xc0] sm:$0xff]  ;;  %v365_v31 = vld [vmem:[%s3339_s5 + $0x470] sm:$0xff] }
  0xaf   :  { %741 = vmatpush2.msra.mxu1 %v411_v32  ;;  %790 = vmatpush1.msra.mxu0 %v245_v33  ;;  %v941_v32 = vld [vmem:[%s3342_s8 + $0x40] sm:$0xff]  ;;  %v358_v33 = vld [vmem:[%s3339_s5 + $0x438] sm:$0xff] }
  0xb0   :  { %742 = vmatprep.subr.mxu1 %v404_v34  ;;  %791 = vmatprep.subr.mxu0 %v238_v35  ;;  %v956_v34 = vld [vmem:[%s3342_s8 + $0xb8] sm:$0xff]  ;;  %v357_v35 = vld [vmem:[%s3339_s5 + $0x430] sm:$0xff] }
  0xb1   :  { %743 = vmatpush2.msra.mxu1 %v403_v36  ;;  %792 = vmatpush1.msra.mxu0 %v237_v37  ;;  %v940_v36 = vld [vmem:[%s3342_s8 + $0x38] sm:$0xff]  ;;  %v955_v37 = vld [vmem:[%s3342_s8 + $0xb0] sm:$0xff] }
  0xb2   :  { %744 = vmatprep.subr.mxu1 %v396_v38  ;;  %793 = vmatprep.subr.mxu0 %v230_v39  ;;  %v939_v38 = vld [vmem:[%s3342_s8 + $0x30] sm:$0xff]  ;;  %v996_v39 = vld [vmem:[%s3342_s8 + $0x1f8] sm:$0xff] }
  0xb3   :  { %745 = vmatpush2.msra.mxu1 %v395_v40  ;;  %794 = vmatpush1.msra.mxu0 %v229_v41  ;;  %v954_v40 = vld [vmem:[%s3342_s8 + $0xa8] sm:$0xff]  ;;  %v980_v41 = vld [vmem:[%s3342_s8 + $0x178] sm:$0xff] }
  0xb4   :  { %746 = vmatprep.subr.mxu1 %v388_v42  ;;  %1520 = vmatprep.subr.msk.mxu0 %vm142_vm0, %v470_v43  ;;  %v938_v42 = vld [vmem:[%s3342_s8 + $0x28] sm:$0xff]  ;;  %v995_v43 = vld [vmem:[%s3342_s8 + $0x1f0] sm:$0xff] }
  0xb5   :  { %747 = vmatpush2.msra.mxu1 %v387_v44  ;;  %1521 = vmatpush2.msk.msra.mxu0 %vm142_vm0, %v469_v45  ;;  %v953_v44 = vld [vmem:[%s3342_s8 + $0xa0] sm:$0xff]  ;;  %v979_v45 = vld [vmem:[%s3342_s8 + $0x170] sm:$0xff] }
  0xb6   :  { %748 = vmatprep.subr.mxu1 %v380_v46  ;;  %799 = vmatprep.subr.mxu0 %v462_v47  ;;  %v994_v46 = vld [vmem:[%s3342_s8 + $0x1e8] sm:$0xff]  ;;  %v952_v47 = vld [vmem:[%s3342_s8 + $0x98] sm:$0xff] }
  0xb7   :  { %749 = vmatpush2.msra.mxu1 %v379_v48  ;;  %800 = vmatpush2.msra.mxu0 %v461_v49  ;;  %v978_v48 = vld [vmem:[%s3342_s8 + $0x168] sm:$0xff]  ;;  %v936_v49 = vld [vmem:[%s3342_s8 + $0x18] sm:$0xff] }
  0xb8   :  { %750 = vmatprep.subr.mxu1 %v372_v50  ;;  %801 = vmatprep.subr.mxu0 %v454_v51  ;;  %v993_v50 = vld [vmem:[%s3342_s8 + $0x1e0] sm:$0xff]  ;;  %v951_v51 = vld [vmem:[%s3342_s8 + $0x90] sm:$0xff] }
  0xb9   :  { %751 = vmatpush2.msra.mxu1 %v371_v52  ;;  %802 = vmatpush2.msra.mxu0 %v453_v53  ;;  %v977_v52 = vld [vmem:[%s3342_s8 + $0x160] sm:$0xff]  ;;  %v935_v53 = vld [vmem:[%s3342_s8 + $0x10] sm:$0xff] }
  0xba   :  { %752 = vmatprep.subr.mxu1 %v364_v54  ;;  %803 = vmatprep.subr.mxu0 %v446_v56  ;;  %v992_v54 = vld [vmem:[%s3342_s8 + $0x1d8] sm:$0xff]  ;;  %v950_v56 = vld [vmem:[%s3342_s8 + $0x88] sm:$0xff] }
  0xbb   :  { %753 = vmatpush2.msra.mxu1 %v363_v57  ;;  %804 = vmatpush2.msra.mxu0 %v445_v58  ;;  %v976_v57 = vld [vmem:[%s3342_s8 + $0x158] sm:$0xff]  ;;  %v934_v58 = vld [vmem:[%s3342_s8 + $0x8] sm:$0xff] }
  0xbc   :  { %754 = vmatprep.subr.mxu1 %v356_v59  ;;  %805 = vmatprep.subr.mxu0 %v438_v60  ;;  %v991_v59 = vld [vmem:[%s3342_s8 + $0x1d0] sm:$0xff]  ;;  %v949_v60 = vld [vmem:[%s3342_s8 + $0x80] sm:$0xff] }
  0xbd   :  { %755 = vmatpush2.msra.mxu1 %v355_v61  ;;  %1519 = vmatprep.mubr.msk.f32.mxu1 %vm523_vm2, %v2343_v62  ;;  %v975_v61 = vld [vmem:[%s3342_s8 + $0x150] sm:$0xff] }
  0xbe   :  { %806 = vmatpush2.msra.mxu0 %v437_v63  ;;  %757 = vmatmul.mubr.f32.vlgmr.msra.gmra.mxu1 %v2321_v55  ;;  %v933_v63 = vld [vmem:[%s3342_s8] sm:$0xff] }
  0xbf   :  { %807 = vmatprep.subr.mxu0 %v430_v0  ;;  %1522 = vmatprep.mubr.msk.f32.mxu0 %vm523_vm2, %v2343_v62  ;;  %v962_v62 = vld [vmem:[%s3342_s8 + $0xe8] sm:$0xff] }
  0xc0   :  { %808 = vmatpush2.msra.mxu0 %v429_v1  ;;  %1527 = vmatprep.subr.mxu1 %v964_v3  ;;  %v990_v0 = vld [vmem:[%s3342_s8 + $0x1c8] sm:$0xff]  ;;  %v989_v3 = vld [vmem:[%s3342_s8 + $0x1c0] sm:$0xff] }
  0xc1   :  { %809 = vmatprep.subr.mxu0 %v422_v2  ;;  %1528 = vmatpush3.msra.mxu1 %v948_v5  ;;  %v974_v1 = vld [vmem:[%s3342_s8 + $0x148] sm:$0xff]  ;;  %v1028_v2 = vld [vmem:[%s3342_s8 + $0x2f8] sm:$0xff] }
  0xc2   :  { %810 = vmatpush2.msra.mxu0 %v421_v4  ;;  %1529 = vmatprep.subr.mxu1 %v963_v7  ;;  %v973_v4 = vld [vmem:[%s3342_s8 + $0x140] sm:$0xff]  ;;  %v988_v5 = vld [vmem:[%s3342_s8 + $0x1b8] sm:$0xff]  ;;  %v987_v7 = vld [vmem:[%s3342_s8 + $0x1b0] sm:$0xff] }
  0xc3   :  { %811 = vmatprep.subr.mxu0 %v414_v6  ;;  %1530 = vmatpush3.msra.mxu1 %v947_v9  ;;  %v972_v6 = vld [vmem:[%s3342_s8 + $0x138] sm:$0xff]  ;;  %v986_v9 = vld [vmem:[%s3342_s8 + $0x1a8] sm:$0xff] }
  0xc4   :  { %812 = vmatpush2.msra.mxu0 %v413_v8  ;;  %1531 = vmatprep.subr.mxu1 %v962_v62  ;;  %v971_v8 = vld [vmem:[%s3342_s8 + $0x130] sm:$0xff]  ;;  %v985_v62 = vld [vmem:[%s3342_s8 + $0x1a0] sm:$0xff] }
  0xc5   :  { %813 = vmatprep.subr.mxu0 %v406_v10  ;;  %1532 = vmatpush3.msra.mxu1 %v946_v12  ;;  %v970_v10 = vld [vmem:[%s3342_s8 + $0x128] sm:$0xff]  ;;  %v984_v12 = vld [vmem:[%s3342_s8 + $0x198] sm:$0xff] }
  0xc6   :  { %814 = vmatpush2.msra.mxu0 %v405_v11  ;;  %1533 = vmatprep.subr.mxu1 %v961_v14  ;;  %v969_v11 = vld [vmem:[%s3342_s8 + $0x120] sm:$0xff]  ;;  %v983_v14 = vld [vmem:[%s3342_s8 + $0x190] sm:$0xff] }
  0xc7   :  { %815 = vmatprep.subr.mxu0 %v398_v13  ;;  %1534 = vmatpush3.msra.mxu1 %v945_v16  ;;  %v968_v13 = vld [vmem:[%s3342_s8 + $0x118] sm:$0xff]  ;;  %v982_v16 = vld [vmem:[%s3342_s8 + $0x188] sm:$0xff] }
  0xc8   :  { %816 = vmatpush2.msra.mxu0 %v397_v15  ;;  %1535 = vmatprep.subr.mxu1 %v960_v18  ;;  %v967_v15 = vld [vmem:[%s3342_s8 + $0x110] sm:$0xff]  ;;  %v981_v18 = vld [vmem:[%s3342_s8 + $0x180] sm:$0xff] }
  0xc9   :  { %817 = vmatprep.subr.mxu0 %v390_v17  ;;  %1536 = vmatpush3.msra.mxu1 %v944_v20  ;;  %v966_v17 = vld [vmem:[%s3342_s8 + $0x108] sm:$0xff]  ;;  %v1060_v20 = vld [vmem:[%s3342_s8 + $0x3f8] sm:$0xff] }
  0xca   :  { %818 = vmatpush2.msra.mxu0 %v389_v19  ;;  %1537 = vmatprep.subr.mxu1 %v959_v22  ;;  %v965_v19 = vld [vmem:[%s3342_s8 + $0x100] sm:$0xff] }
  0xcb   :  { %819 = vmatprep.subr.mxu0 %v382_v21  ;;  %1538 = vmatpush3.msra.mxu1 %v943_v24  ;;  %v128_v21 = vlaneseq  ;;  %v126_v24 = vld [vmem:[#allocation7] sm:$0x3] }
  0xcc   :  { %820 = vmatpush2.msra.mxu0 %v381_v23  ;;  %1539 = vmatprep.subr.mxu1 %v958_v26 }
  0xcd   :  { %821 = vmatprep.subr.mxu0 %v374_v25  ;;  %1540 = vmatpush3.msra.mxu1 %v942_v28  ;;  %v2994_v22 = vshrl.u32 %v128_v21, 7 }
  0xce   :  { %822 = vmatpush2.msra.mxu0 %v373_v27  ;;  %1541 = vmatprep.subr.mxu1 %v957_v30 }
  0xcf   :  { %823 = vmatprep.subr.mxu0 %v366_v29  ;;  %1542 = vmatpush3.msra.mxu1 %v941_v32  ;;  %v130_v23 = vsub.s32 0, %v2994_v22  ;;  %v134_v25 = vsub.s32 1, %v2994_v22 }
  0xd0   :  { %824 = vmatpush2.msra.mxu0 %v365_v31  ;;  %1543 = vmatprep.subr.mxu1 %v956_v34 }
  0xd1   :  { %825 = vmatprep.subr.mxu0 %v358_v33  ;;  %1544 = vmatpush3.msra.mxu1 %v940_v36  ;;  %v131_v26 = vrot.slane %v126_v24, %v130_v23  ;;  %v135_v27 = vrot.slane %v126_v24, %v134_v25  ;;  %v1920_v36 = vmov 0   ;;  %v1059_v24 = vld [vmem:[%s3342_s8 + $0x3f0] sm:$0xff] }
  0xd2   :  { %826 = vmatpush2.msra.mxu0 %v357_v35  ;;  %1545 = vmatprep.subr.mxu1 %v955_v37  ;;  %v900_v35 = vld [vmem:[#allocation2] sm:$0x3]  ;;  %v1921_v37 = vmov 1  }
  0xd3   :  { %828 = vmatmul.mubr.f32.vlgmr.msra.gmra.mxu0 %v2321_v55  ;;  %1546 = vmatpush3.msra.mxu1 %v939_v38  ;;  %v937_v55 = vld [vmem:[%s3342_s8 + $0x20] sm:$0xff] }
  0xd4   :  { %1562 = vmatprep.subr.mxu0 %v996_v39  ;;  %1547 = vmatprep.subr.mxu1 %v954_v40  ;;  %v3008_v38 = vld [vmem:[#allocation8] sm:$0xff] }
  0xd5   :  { %1563 = vmatpush3.msra.mxu0 %v980_v41  ;;  %1548 = vmatpush3.msra.mxu1 %v938_v42  ;;  %v476_v39 = vrot.slane %v3008_v38, %v130_v23  ;;  %v480_v40 = vrot.slane %v3008_v38, %v134_v25  ;;  %v1001_v23 = vld [vmem:[%s3342_s8 + $0x220] sm:$0xff]  ;;  %v1016_v25 = vld [vmem:[%s3342_s8 + $0x298] sm:$0xff] }
  0xd6   :  { %1564 = vmatprep.subr.mxu0 %v995_v43  ;;  %1549 = vmatprep.subr.mxu1 %v953_v44 }
  0xd7   :  { %1565 = vmatpush3.msra.mxu0 %v979_v45  ;;  %1550 = vmatpush3.msra.mxu1 %v937_v55 }
  0xd8   :  { %1566 = vmatprep.subr.mxu0 %v994_v46  ;;  %1551 = vmatprep.subr.mxu1 %v952_v47  ;;  %v1012_v46 = vld [vmem:[%s3342_s8 + $0x278] sm:$0xff]  ;;  %v1027_v47 = vld [vmem:[%s3342_s8 + $0x2f0] sm:$0xff] }
  0xd9   :  { %1567 = vmatpush3.msra.mxu0 %v978_v48  ;;  %1552 = vmatpush3.msra.mxu1 %v936_v49  ;;  %v1011_v48 = vld [vmem:[%s3342_s8 + $0x270] sm:$0xff]  ;;  %v1026_v49 = vld [vmem:[%s3342_s8 + $0x2e8] sm:$0xff] }
  0xda   :  { %1568 = vmatprep.subr.mxu0 %v993_v50  ;;  %1553 = vmatprep.subr.mxu1 %v951_v51  ;;  %v1010_v50 = vld [vmem:[%s3342_s8 + $0x268] sm:$0xff]  ;;  %v1025_v51 = vld [vmem:[%s3342_s8 + $0x2e0] sm:$0xff] }
  0xdb   :  { %1569 = vmatpush3.msra.mxu0 %v977_v52  ;;  %1554 = vmatpush3.msra.mxu1 %v935_v53  ;;  %v1009_v52 = vld [vmem:[%s3342_s8 + $0x260] sm:$0xff]  ;;  %v1024_v53 = vld [vmem:[%s3342_s8 + $0x2d8] sm:$0xff] }
  0xdc   :  { %1570 = vmatprep.subr.mxu0 %v992_v54  ;;  %1555 = vmatprep.subr.mxu1 %v950_v56  ;;  %v483_v54 = vsub.s32 2, %v2994_v22  ;;  %v1008_v56 = vld [vmem:[%s3342_s8 + $0x258] sm:$0xff] }
  0xdd   :  { %1571 = vmatpush3.msra.mxu0 %v976_v57  ;;  %1556 = vmatpush3.msra.mxu1 %v934_v58  ;;  %v1023_v57 = vld [vmem:[%s3342_s8 + $0x2d0] sm:$0xff]  ;;  %v487_v58 = vsub.s32 3, %v2994_v22 }
  0xde   :  { %1572 = vmatprep.subr.mxu0 %v991_v59  ;;  %1557 = vmatprep.subr.mxu1 %v949_v60  ;;  %v1007_v59 = vld [vmem:[%s3342_s8 + $0x250] sm:$0xff]  ;;  %v1022_v60 = vld [vmem:[%s3342_s8 + $0x2c8] sm:$0xff] }
  0xdf   :  { %1573 = vmatpush3.msra.mxu0 %v975_v61  ;;  %1558 = vmatpush3.msra.mxu1 %v933_v63  ;;  %v1922_v61 = vmov 1983009808  }
  0xe0   :  { %1574 = vmatprep.subr.mxu0 %v990_v0  ;;  %1597 = vmatprep.subr.mxu1 %v1028_v2  ;;  %v865_v63 = vunpack.c.l.s4 %v1922_v61  ;;  %v484_v0 = vrot.slane %v3008_v38, %v483_v54  ;;  %v1021_v2 = vld [vmem:[%s3342_s8 + $0x2c0] sm:$0xff]  ;;  %v1052_v54 = vld [vmem:[%s3342_s8 + $0x3b8] sm:$0xff] }
  0xe1   :  { %1575 = vmatpush3.msra.mxu0 %v974_v1  ;;  %1718 = vset.pattern.permute.xlu0 %v1920_v36  ;;  %v1006_v1 = vld [vmem:[%s3342_s8 + $0x248] sm:$0xff]  ;;  %v1049_v61 = vld [vmem:[%s3342_s8 + $0x3a0] sm:$0xff] }
  0xe2   :  { %1576 = vmatprep.subr.mxu0 %v989_v3  ;;  %1414 = vperm.xlu0 %1718, %v900_v35   ;;  %v488_v3 = vrot.slane %v3008_v38, %v487_v58  ;;  %v1042_v36 = vld [vmem:[%s3342_s8 + $0x368] sm:$0xff]  ;;  %v1035_v58 = vld [vmem:[%s3342_s8 + $0x330] sm:$0xff] }
  0xe3   :  { %1577 = vmatpush3.msra.mxu0 %v973_v4  ;;  %v1005_v4 = vld [vmem:[%s3342_s8 + $0x240] sm:$0xff] }
  0xe4   :  { %1578 = vmatprep.subr.mxu0 %v988_v5 }
  0xe5   :  { %1579 = vmatpush3.msra.mxu0 %v972_v6  ;;  %v1020_v6 = vld [vmem:[%s3342_s8 + $0x2b8] sm:$0xff] }
  0xe6   :  { %1580 = vmatprep.subr.mxu0 %v987_v7  ;;  %1719 = vset.pattern.permute.xlu0 %v1921_v37  ;;  %v866_v7 = vunpack.c.0.s8 %v865_v63  ;;  %v999_v37 = vld [vmem:[%s3342_s8 + $0x210] sm:$0xff]  ;;  %v1033_v63 = vld [vmem:[%s3342_s8 + $0x320] sm:$0xff] }
  0xe7   :  { %1581 = vmatpush3.msra.mxu0 %v971_v8  ;;  %1425 = vperm.xlu0 %1719, %v900_v35   ;;  %v1015_v35 = vld [vmem:[%s3342_s8 + $0x290] sm:$0xff] }
  0xe8   :  { %1582 = vmatprep.subr.mxu0 %v986_v9  ;;  %v1004_v9 = vld [vmem:[%s3342_s8 + $0x238] sm:$0xff] }
  0xe9   :  { %1583 = vmatpush3.msra.mxu0 %v970_v10 }
  0xea   :  { %1584 = vmatprep.subr.mxu0 %v985_v62  ;;  %v1019_v62 = vld [vmem:[%s3342_s8 + $0x2b0] sm:$0xff] }
  0xeb   :  { %1585 = vmatpush3.msra.mxu0 %v969_v11 }
  0xec   :  { %1586 = vmatprep.subr.mxu0 %v984_v12 }
  0xed   :  { %1587 = vmatpush3.msra.mxu0 %v968_v13  ;;  %v1003_v13 = vld [vmem:[%s3342_s8 + $0x230] sm:$0xff] }
  0xee   :  { %1588 = vmatprep.subr.mxu0 %v983_v14  ;;  %v1018_v14 = vld [vmem:[%s3342_s8 + $0x2a8] sm:$0xff] }
  0xef   :  { %1589 = vmatpush3.msra.mxu0 %v967_v15 }
  0xf0   :  { %1590 = vmatprep.subr.mxu0 %v982_v16  ;;  %v3077_v16 = vsub.s32 %v866_v7, %v2994_v22  ;;  %v1029_v7 = vld [vmem:[%s3342_s8 + $0x300] sm:$0xff] }
  0xf1   :  { %1591 = vmatpush3.msra.mxu0 %v966_v17 }
  0xf2   :  { %1592 = vmatprep.subr.mxu0 %v981_v18  ;;  %v1002_v18 = vld [vmem:[%s3342_s8 + $0x228] sm:$0xff] }
  0xf3   :  { %1593 = vmatpush3.msra.mxu0 %v965_v19  ;;  %v1017_v19 = vld [vmem:[%s3342_s8 + $0x2a0] sm:$0xff] }
  0xf4   :  { %1632 = vmatprep.subr.mxu0 %v1060_v20  ;;  %v1044_v20 = vld [vmem:[%s3342_s8 + $0x378] sm:$0xff] }
 0x114   :  { %v215_v28 = vpop.f32.mrf.mxu0 }
 0x115   :  { %v2998_v29 = vadd.f32 %v215_v28, %v131_v26  ;;  %v1043_v26 = vld [vmem:[%s3342_s8 + $0x370] sm:$0xff] }
 0x116   :  { %v217_v30 = vpop.f32.mrf.mxu0 }
 0x117   :  { %v220_v31 = vmax.f32 %v2998_v29, 0.0  ;;  %v3001_v32 = vadd.f32 %v217_v30, %v135_v27  ;;  %v1000_v30 = vld [vmem:[%s3342_s8 + $0x218] sm:$0xff]  ;;  %v1525_v29 = vld [vmem:[#allocation10 + $0x1] ss:$0 sm:$0xff] }
 0x119   :  { %v221_v33 = vmax.f32 %v3001_v32, 0.0  ;;  %v913_v32 = vld [vmem:[%s3341_s7 + $0x60] sm:$0xff] }
 0x11b   :  { %v844_v34 = vcombine.low %v220_v31, %v221_v33 }
 0x11d   :  { %1523 = vst.sshfl [vmem:[#allocation14] sm:$0x33 pattern:$0x76325410] %v844_v34  ;;  %v1058_v34 = vld [vmem:[%s3342_s8 + $0x3e8] sm:$0xff] }
 0x13e   :  { %v616_v41 = vpop.f32.mrf.mxu1 }
 0x13f   :  { %v617_v42 = vadd.f32 %v616_v41, %v476_v39  ;;  %v1057_v39 = vld [vmem:[%s3342_s8 + $0x3e0] sm:$0xff]  ;;  %v1014_v41 = vld [vmem:[%s3342_s8 + $0x288] sm:$0xff] }
 0x140   :  { %v618_v43 = vpop.f32.mrf.mxu1 }
 0x141   :  { %v619_v44 = vadd.f32 %v618_v43, %v480_v40  ;;  %v834_v55 = vmax.f32 %v617_v42, 0.0  ;;  %v1041_v42 = vld [vmem:[%s3342_s8 + $0x360] sm:$0xff]  ;;  %v998_v43 = vld [vmem:[%s3342_s8 + $0x208] sm:$0xff] }
 0x143   :  { %v835_v45 = vmax.f32 %v619_v44, 0.0  ;;  %v1056_v44 = vld [vmem:[%s3342_s8 + $0x3d8] sm:$0xff] }
 0x145   :  { %1125 = vmatprep.mubr.f32.mxu1 %v835_v45  ;;  %v862_v15 = vcombine.low %v834_v55, %v835_v45  ;;  %v1013_v45 = vld [vmem:[%s3342_s8 + $0x280] sm:$0xff] }
 0x146   :  { %1126 = vmatmul.mubr.f32.vlgmr.msra.gmra.mxu1 %v834_v55  ;;  %v1040_v55 = vld [vmem:[%s3342_s8 + $0x358] sm:$0xff] }
 0x147   :  { %1598 = vmatpush3.msra.mxu1 %v1012_v46  ;;  %v870_v27 = vrot.slane %v862_v15, %v3077_v16  ;;  %v997_v46 = vld [vmem:[%s3342_s8 + $0x200] sm:$0xff] }
 0x148   :  { %1599 = vmatprep.subr.mxu1 %v1027_v47  ;;  %v1055_v47 = vld [vmem:[%s3342_s8 + $0x3d0] sm:$0xff] }
 0x149   :  { %1600 = vmatpush3.msra.mxu1 %v1011_v48  ;;  %v1039_v48 = vld [vmem:[%s3342_s8 + $0x350] sm:$0xff] }
 0x14a   :  { %1601 = vmatprep.subr.mxu1 %v1026_v49  ;;  %v932_v49 = vld [vmem:[%s3341_s7 + $0xf8] sm:$0xff] }
 0x14b   :  { %1602 = vmatpush3.msra.mxu1 %v1010_v50  ;;  %v1054_v50 = vld [vmem:[%s3342_s8 + $0x3c8] sm:$0xff] }
 0x14c   :  { %1603 = vmatprep.subr.mxu1 %v1025_v51  ;;  %v1038_v51 = vld [vmem:[%s3342_s8 + $0x348] sm:$0xff] }
 0x14d   :  { %1604 = vmatpush3.msra.mxu1 %v1009_v52  ;;  %v1053_v52 = vld [vmem:[%s3342_s8 + $0x3c0] sm:$0xff] }
 0x14e   :  { %1605 = vmatprep.subr.mxu1 %v1024_v53  ;;  %v1037_v53 = vld [vmem:[%s3342_s8 + $0x340] sm:$0xff] }
 0x14f   :  { %1606 = vmatpush3.msra.mxu1 %v1008_v56  ;;  %v1036_v56 = vld [vmem:[%s3342_s8 + $0x338] sm:$0xff] }
 0x150   :  { %1607 = vmatprep.subr.mxu1 %v1023_v57  ;;  %v1051_v57 = vld [vmem:[%s3342_s8 + $0x3b0] sm:$0xff] }
 0x151   :  { %1608 = vmatpush3.msra.mxu1 %v1007_v59  ;;  %v1050_v59 = vld [vmem:[%s3342_s8 + $0x3a8] sm:$0xff] }
 0x152   :  { %1609 = vmatprep.subr.mxu1 %v1022_v60  ;;  %v1034_v60 = vld [vmem:[%s3342_s8 + $0x328] sm:$0xff] }
 0x153   :  { %v687_v5 = vpop.f32.mrf.mxu0  ;;  %1610 = vmatpush3.msra.mxu1 %v1006_v1  ;;  %v1032_v1 = vld [vmem:[%s3342_s8 + $0x318] sm:$0xff] }
 0x154   :  { %v688_v8 = vadd.f32 %v687_v5, %v484_v0  ;;  %1611 = vmatprep.subr.mxu1 %v1021_v2  ;;  %v1048_v0 = vld [vmem:[%s3342_s8 + $0x398] sm:$0xff]  ;;  %v1047_v2 = vld [vmem:[%s3342_s8 + $0x390] sm:$0xff]  ;;  %v1030_v5 = vld [vmem:[%s3342_s8 + $0x308] sm:$0xff] }
 0x155   :  { %v689_v10 = vpop.f32.mrf.mxu0  ;;  %1612 = vmatpush3.msra.mxu1 %v1005_v4  ;;  %v1046_v4 = vld [vmem:[%s3342_s8 + $0x388] sm:$0xff] }
 0x156   :  { %v836_v11 = vmax.f32 %v688_v8, 0.0  ;;  %v690_v12 = vadd.f32 %v689_v10, %v488_v3  ;;  %1613 = vmatprep.subr.mxu1 %v1020_v6  ;;  %v1031_v3 = vld [vmem:[%s3342_s8 + $0x310] sm:$0xff]  ;;  %v1045_v6 = vld [vmem:[%s3342_s8 + $0x380] sm:$0xff]  ;;  %v491_v8 = vsub.s32 4, %v2994_v22 }
 0x157   :  { %1614 = vmatpush3.msra.mxu1 %v1004_v9  ;;  %v495_v9 = vsub.s32 5, %v2994_v22 }
 0x158   :  { %v837_v17 = vmax.f32 %v690_v12, 0.0  ;;  %1615 = vmatprep.subr.mxu1 %v1019_v62  ;;  %v492_v10 = vrot.slane %v3008_v38, %v491_v8 }
 0x159   :  { %1616 = vmatpush3.msra.mxu1 %v1003_v13  ;;  %v496_v62 = vrot.slane %v3008_v38, %v495_v9 }
 0x15a   :  { %v863_v21 = vcombine.low %v836_v11, %v837_v17  ;;  %1195 = vmatprep.mubr.f32.mxu0 %v837_v17  ;;  %1617 = vmatprep.subr.mxu1 %v1018_v14 }
 0x15b   :  { %1196 = vmatmul.mubr.f32.vlgmr.msra.gmra.mxu0 %v836_v11  ;;  %1618 = vmatpush3.msra.mxu1 %v1002_v18  ;;  %v916_v18 = vld [vmem:[%s3341_s7 + $0x78] sm:$0xff] }
 0x15c   :  { %v877_v28 = vrot.slane %v863_v21, %v3077_v16  ;;  %1619 = vmatprep.subr.mxu1 %v1017_v19  ;;  %1633 = vmatpush3.msra.mxu0 %v1044_v20  ;;  %v931_v19 = vld [vmem:[%s3341_s7 + $0xf0] sm:$0xff]  ;;  %v930_v21 = vld [vmem:[%s3341_s7 + $0xe8] sm:$0xff] }
 0x15d   :  { %1620 = vmatpush3.msra.mxu1 %v1001_v23  ;;  %1634 = vmatprep.subr.mxu0 %v1059_v24  ;;  %v915_v20 = vld [vmem:[%s3341_s7 + $0x70] sm:$0xff]  ;;  %v914_v23 = vld [vmem:[%s3341_s7 + $0x68] sm:$0xff]  ;;  %v929_v24 = vld [vmem:[%s3341_s7 + $0xe0] sm:$0xff] }
 0x15e   :  { %1621 = vmatprep.subr.mxu1 %v1016_v25  ;;  %1635 = vmatpush3.msra.mxu0 %v1043_v26  ;;  %v878_v40 = vcombine.low %v870_v27, %v877_v28  ;;  %v499_v25 = vsub.s32 6, %v2994_v22  ;;  %v912_v26 = vld [vmem:[%s3341_s7 + $0x58] sm:$0xff]  ;;  %v927_v27 = vld [vmem:[%s3341_s7 + $0xd0] sm:$0xff]  ;;  %v503_v28 = vsub.s32 7, %v2994_v22  ;;  %v925_v22 = vld [vmem:[%s3341_s7 + $0xc0] sm:$0xff] }
 0x15f   :  { %1622 = vmatpush3.msra.mxu1 %v1000_v30  ;;  %1636 = vmatprep.subr.mxu0 %v1058_v34  ;;  %v911_v30 = vld [vmem:[%s3341_s7 + $0x50] sm:$0xff]  ;;  %v926_v34 = vld [vmem:[%s3341_s7 + $0xc8] sm:$0xff] }
 0x160   :  { %1623 = vmatprep.subr.mxu1 %v1015_v35  ;;  %1637 = vmatpush3.msra.mxu0 %v1042_v36  ;;  %898 = vst [vmem:[#allocation15] sm:$0xff] %v878_v40  ;;  %v500_v35 = vrot.slane %v3008_v38, %v499_v25  ;;  %v910_v36 = vld [vmem:[%s3341_s7 + $0x48] sm:$0xff]  ;;  %v909_v40 = vld [vmem:[%s3341_s7 + $0x40] sm:$0xff] }
 0x161   :  { %1624 = vmatpush3.msra.mxu1 %v999_v37  ;;  %1638 = vmatprep.subr.mxu0 %v1057_v39  ;;  %v504_v37 = vrot.slane %v3008_v38, %v503_v28 }
 0x162   :  { %1625 = vmatprep.subr.mxu1 %v1014_v41  ;;  %1639 = vmatpush3.msra.mxu0 %v1041_v42  ;;  %v924_v42 = vld [vmem:[%s3341_s7 + $0xb8] sm:$0xff] }
 0x163   :  { %1626 = vmatpush3.msra.mxu1 %v998_v43  ;;  %1640 = vmatprep.subr.mxu0 %v1056_v44  ;;  %v908_v44 = vld [vmem:[%s3341_s7 + $0x38] sm:$0xff] }
 0x164   :  { %1627 = vmatprep.subr.mxu1 %v1013_v45  ;;  %1641 = vmatpush3.msra.mxu0 %v1040_v55  ;;  %v923_v55 = vld [vmem:[%s3341_s7 + $0xb0] sm:$0xff] }
 0x165   :  { %1628 = vmatpush3.msra.mxu1 %v997_v46  ;;  %1642 = vmatprep.subr.mxu0 %v1055_v47  ;;  %v907_v46 = vld [vmem:[%s3341_s7 + $0x30] sm:$0xff] }
 0x166   :  { %1643 = vmatpush3.msra.mxu0 %v1039_v48  ;;  %1667 = vmatprep.subr.mxu1 %v932_v49  ;;  %v922_v49 = vld [vmem:[%s3341_s7 + $0xa8] sm:$0xff] }
 0x167   :  { %1644 = vmatprep.subr.mxu0 %v1054_v50  ;;  %v906_v50 = vld [vmem:[%s3341_s7 + $0x28] sm:$0xff] }
 0x168   :  { %1645 = vmatpush3.msra.mxu0 %v1038_v51 }
 0x169   :  { %1646 = vmatprep.subr.mxu0 %v1053_v52  ;;  %v921_v52 = vld [vmem:[%s3341_s7 + $0xa0] sm:$0xff] }
 0x16a   :  { %1647 = vmatpush3.msra.mxu0 %v1037_v53  ;;  %v905_v53 = vld [vmem:[%s3341_s7 + $0x20] sm:$0xff] }
 0x16b   :  { %1648 = vmatprep.subr.mxu0 %v1052_v54 }
 0x16c   :  { %1649 = vmatpush3.msra.mxu0 %v1036_v56 }
 0x16d   :  { %1650 = vmatprep.subr.mxu0 %v1051_v57  ;;  %v920_v57 = vld [vmem:[%s3341_s7 + $0x98] sm:$0xff] }
 0x16e   :  { %1651 = vmatpush3.msra.mxu0 %v1035_v58  ;;  %v904_v58 = vld [vmem:[%s3341_s7 + $0x18] sm:$0xff] }
 0x16f   :  { %1652 = vmatprep.subr.mxu0 %v1050_v59  ;;  %v919_v59 = vld [vmem:[%s3341_s7 + $0x90] sm:$0xff] }
 0x170   :  { %1653 = vmatpush3.msra.mxu0 %v1034_v60 }
 0x171   :  { %1654 = vmatprep.subr.mxu0 %v1049_v61  ;;  %v918_v61 = vld [vmem:[%s3341_s7 + $0x88] sm:$0xff] }
 0x172   :  { %1655 = vmatpush3.msra.mxu0 %v1033_v63  ;;  %v902_v63 = vld [vmem:[%s3341_s7 + $0x8] sm:$0xff] }
 0x173   :  { %1656 = vmatprep.subr.mxu0 %v1048_v0  ;;  %v917_v0 = vld [vmem:[%s3341_s7 + $0x80] sm:$0xff] }
 0x174   :  { %1657 = vmatpush3.msra.mxu0 %v1032_v1  ;;  %v901_v1 = vld [vmem:[%s3341_s7] sm:$0xff] }
 0x175   :  { %1658 = vmatprep.subr.mxu0 %v1047_v2 }
 0x176   :  { %1659 = vmatpush3.msra.mxu0 %v1031_v3 }
 0x177   :  { %1660 = vmatprep.subr.mxu0 %v1046_v4 }
 0x178   :  { %1661 = vmatpush3.msra.mxu0 %v1030_v5 }
 0x179   :  { %1662 = vmatprep.subr.mxu0 %v1045_v6 }
 0x17a   :  { %1663 = vmatpush3.msra.mxu0 %v1029_v7 }
 0x17e   :  { %v758_v11 = vpop.f32.mrf.mxu1 }
 0x17f   :  { %v759_v12 = vadd.f32 %v758_v11, %v492_v10 }
 0x180   :  { %v760_v13 = vpop.f32.mrf.mxu1 }
 0x181   :  { %v761_v14 = vadd.f32 %v760_v13, %v496_v62  ;;  %v838_v17 = vmax.f32 %v759_v12, 0.0  ;;  %v1415_v62 = vpop.permute.xlu0 %1414 }
 0x183   :  { %v839_v15 = vmax.f32 %v761_v14, 0.0 }
 0x185   :  { %1265 = vmatprep.mubr.f32.mxu1 %v839_v15  ;;  %v879_v47 = vcombine.low %v838_v17, %v839_v15 }
 0x186   :  { %1266 = vmatmul.mubr.f32.vlgmr.msra.gmra.mxu1 %v838_v17 }
 0x187   :  { %1668 = vmatpush3.msra.mxu1 %v916_v18  ;;  %1405 = vmatprep.mubr.f32.mxu1 %v221_v33  ;;  %v928_v33 = vld [vmem:[%s3341_s7 + $0xd8] sm:$0xff]  ;;  %v887_v54 = vrot.slane %v879_v47, %v3077_v16  ;;  %v1524_v18 = vld [vmem:[#allocation10] ss:$0 sm:$0xff] }
 0x188   :  { %1669 = vmatprep.subr.mxu1 %v931_v19 }
 0x189   :  { %1670 = vmatpush3.msra.mxu1 %v915_v20 }
 0x18a   :  { %1671 = vmatprep.subr.mxu1 %v930_v21 }
 0x18b   :  { %1672 = vmatpush3.msra.mxu1 %v914_v23  ;;  %v1421_v23 = vmul.f32 %v1524_v18, %v1415_v62 }
 0x18c   :  { %1673 = vmatprep.subr.mxu1 %v929_v24 }
 0x18d   :  { %1674 = vmatpush3.msra.mxu1 %v913_v32 }
 0x18e   :  { %1675 = vmatprep.subr.mxu1 %v928_v33 }
 0x18f   :  { %1676 = vmatpush3.msra.mxu1 %v912_v26 }
 0x190   :  { %1677 = vmatprep.subr.mxu1 %v927_v27 }
 0x191   :  { %1678 = vmatpush3.msra.mxu1 %v911_v30 }
 0x192   :  { %1679 = vmatprep.subr.mxu1 %v926_v34 }
 0x193   :  { %v829_v39 = vpop.f32.mrf.mxu0  ;;  %1680 = vmatpush3.msra.mxu1 %v910_v36 }
 0x194   :  { %v830_v41 = vadd.f32 %v829_v39, %v500_v35  ;;  %1681 = vmatprep.subr.mxu1 %v925_v22 }
 0x195   :  { %v831_v43 = vpop.f32.mrf.mxu0  ;;  %1682 = vmatpush3.msra.mxu1 %v909_v40 }
 0x196   :  { %v840_v45 = vmax.f32 %v830_v41, 0.0  ;;  %v832_v38 = vadd.f32 %v831_v43, %v504_v37  ;;  %1683 = vmatprep.subr.mxu1 %v924_v42 }
 0x197   :  { %1684 = vmatpush3.msra.mxu1 %v908_v44 }
 0x198   :  { %v841_v48 = vmax.f32 %v832_v38, 0.0  ;;  %1685 = vmatprep.subr.mxu1 %v923_v55 }
 0x199   :  { %1686 = vmatpush3.msra.mxu1 %v907_v46 }
 0x19a   :  { %v880_v51 = vcombine.low %v840_v45, %v841_v48  ;;  %1335 = vmatprep.mubr.f32.mxu0 %v841_v48  ;;  %1687 = vmatprep.subr.mxu1 %v922_v49 }
 0x19b   :  { %1336 = vmatmul.mubr.f32.vlgmr.msra.gmra.mxu0 %v840_v45  ;;  %1688 = vmatpush3.msra.mxu1 %v906_v50 }
 0x19c   :  { %v894_v56 = vrot.slane %v880_v51, %v3077_v16  ;;  %1689 = vmatprep.subr.mxu1 %v921_v52  ;;  %v903_v16 = vld [vmem:[%s3341_s7 + $0x10] sm:$0xff]  ;;  %s1923_s7 = smov [#allocation15]  }
 0x19d   :  { %1690 = vmatpush3.msra.mxu1 %v905_v53  ;;  %s1485_s28 = sshll.u32 %s1923_s7, 4  ;;  %s1486_s28 = int_to_ptr.vmem [resolvable:$true] %s1485_s28 }
 0x19e   :  { %v895_v60 = vcombine.low %v887_v54, %v894_v56  ;;  %1691 = vmatprep.subr.mxu1 %v920_v57  ;;  %s1820_s29 = scalar_lea.vmem %s1486_s28, 256  ;;  %p1825_p12 = scmp.lt.s32.totalorder %s1486_s28, %s1486_s28 }
 0x19f   :  { %1692 = vmatpush3.msra.mxu1 %v904_v58  ;;  %p1821_p11 = scmp.ne.s32.totalorder %s1486_s28, %s1820_s29  ;;  %p1826_p13 = scmp.lt.s32.totalorder %s1820_s29, %s1820_s29 }
 0x1a0   :  { %899 = vst [vmem:[#allocation15 + $0x8] sm:$0xff] %v895_v60  ;;  %1693 = vmatprep.subr.mxu1 %v919_v59 }
 0x1a1   :  { %1694 = vmatpush3.msra.mxu1 %v903_v16  ;;  %p1827_p0 = por %p1826_p13, %p1825_p12 }
 0x1a2   :  { %1695 = vmatprep.subr.mxu1 %v918_v61 }
 0x1a3   :  { %1696 = vmatpush3.msra.mxu1 %v902_v63  ;;  %p1828_p1 = pnand %p1827_p0, %p1821_p11 }
 0x1a4   :  { %1697 = vmatprep.subr.mxu1 %v917_v0 }
 0x1a5   :  { %1698 = vmatpush3.msra.mxu1 %v901_v1 }
 0x1a6   :  { %1406 = vmatmul.mubr.f32.vlgmr.msra.gmra.mxu1 %v220_v31  ;;  %v1426_v31 = vpop.permute.xlu0 %1425 }
 0x1a7   :  { %v1432_v32 = vmul.f32 %v1525_v29, %v1426_v31 }
 0x206   :  { %v1559_v2 = vpop.f32.mrf.mxu1 }
 0x208   :  { %v1560_v4 = vpop.f32.mrf.mxu1 }
 0x209   :  { %v1561_v11 = vadd.f32 %v1560_v4, %v1559_v2 }
 0x21b   :  { %v1594_v3 = vpop.f32.mrf.mxu0 }
 0x21d   :  { %v1595_v5 = vpop.f32.mrf.mxu0 }
 0x21e   :  { %v1596_v9 = vadd.f32 %v1595_v5, %v1594_v3 }
 0x220   :  { %v1198_v13 = vadd.f32 %v1596_v9, %v1561_v11 }
 0x246   :  { %v1629_v6 = vpop.f32.mrf.mxu1 }
 0x248   :  { %v1630_v8 = vpop.f32.mrf.mxu1 }
 0x249   :  { %v1631_v12 = vadd.f32 %v1630_v8, %v1629_v6 }
 0x24b   :  { %v1268_v17 = vadd.f32 %v1631_v12, %v1198_v13 }
 0x25b   :  { %v1664_v7 = vpop.f32.mrf.mxu0 }
 0x25d   :  { %v1665_v10 = vpop.f32.mrf.mxu0 }
 0x25e   :  { %v1666_v14 = vadd.f32 %v1665_v10, %v1664_v7 }
 0x260   :  { %v1338_v20 = vadd.f32 %v1666_v14, %v1268_v17 }
 0x266   :  { %v1699_v15 = vpop.f32.mrf.mxu1 }
 0x268   :  { %v1700_v19 = vpop.f32.mrf.mxu1 }
 0x269   :  { %v1701_v21 = vadd.f32 %v1700_v19, %v1699_v15 }
 0x26b   :  { %v1408_v24 = vadd.f32 %v1701_v21, %v1338_v20 }
 0x26c   :  { %1831 = shalt.err (!%p1828_p1)
}
 0x26d   :  { %1488 = dma.vmem_to_hbm [thread:$0]  %s1486_s28, 256, %s3348_s14, [#allocation16]   ;;  %v1422_v33 = vadd.f32 %v1421_v23, %v1408_v24  ;;  %v1526_v25 = vld [vmem:[%s3344_s10] ss:$0 sm:$0xff]  ;;  %vm1442_vm3 = vcmask 107520  }
 0x26e   :  { %s1924_s17 = smov [#allocation11]   ;;  %s1925_s18 = smov 114  }
 0x26f   :  { %s1455_s6 = sshll.u32 %s1924_s17, 4  ;;  %v1433_v26 = vadd.f32 %v1432_v32, %v1422_v33  ;;  %s1456_s6 = int_to_ptr.vmem [resolvable:$true] %s1455_s6 }
 0x270   :  { %s1840_s19 = scalar_lea.vmem %s1456_s6, 32  ;;  %p1845_p3 = scmp.lt.s32.totalorder %s1456_s6, %s1456_s6 }
 0x271   :  { %v1441_v27 = vadd.f32 %v1526_v25, %v1433_v26  ;;  %p1841_p2 = scmp.ne.s32.totalorder %s1456_s6, %s1840_s19  ;;  %p1846_p4 = scmp.lt.s32.totalorder %s1840_s19, %s1840_s19 }
 0x273   :  { %1445 = vrot.lane.b32.xlu1 %v1441_v27, %s1925_s18  ;;  %1443 = vst.msk [vmem:[#allocation11] sm:$0x3] %vm1442_vm3, %v1441_v27  ;;  %p1847_p5 = por %p1846_p4, %p1845_p3 }
 0x275   :  { %p1848_p6 = pnand %p1847_p5, %p1841_p2 }
 0x277   :  { %1851 = shalt.err (!%p1848_p6)
}
 0x278   :  { %1458 = dma.vmem_to_hbm [thread:$0]  %s1456_s6, 32, %s3345_s11, [#allocation4]  }
 0x279   :  { %s1926_s10 = smov [#allocation12]   ;;  %s1927_s4 = smov [#allocation14]  }
 0x27a   :  { %s1465_s20 = sshll.u32 %s1926_s10, 4  ;;  %s1475_s5 = sshll.u32 %s1927_s4, 4  ;;  %s1466_s20 = int_to_ptr.vmem [resolvable:$true] %s1465_s20  ;;  %s1476_s5 = int_to_ptr.vmem [resolvable:$true] %s1475_s5 }
 0x27b   :  { %s1860_s21 = scalar_lea.vmem %s1466_s20, 32  ;;  %p1865_p8 = scmp.lt.s32.totalorder %s1466_s20, %s1466_s20 }
 0x27c   :  { %p1861_p7 = scmp.ne.s32.totalorder %s1466_s20, %s1860_s21  ;;  %p1866_p9 = scmp.lt.s32.totalorder %s1860_s21, %s1860_s21 }
 0x27e   :  { %p1867_p10 = por %p1866_p9, %p1865_p8 }
 0x280   :  { %p1868_p11 = pnand %p1867_p10, %p1861_p7 }
 0x2e5   :  { %v1446_v28 = vpop.permute.xlu1 %1445 }
 0x2e6   :  { %1448 = vst.msk [vmem:[#allocation12] sm:$0x3] %vm1442_vm3, %v1446_v28 }
 0x2e7   :  { %1871 = shalt.err (!%p1868_p11)
}
 0x2e8   :  { %1468 = dma.vmem_to_hbm [thread:$0]  %s1466_s20, 32, %s3346_s12, [#allocation13]  }
 0x2e9   :  { %s1880_s11 = scalar_lea.vmem %s1476_s5, 64  ;;  %p1885_p13 = scmp.lt.s32.totalorder %s1476_s5, %s1476_s5 }
 0x2ea   :  { %p1881_p12 = scmp.ne.s32.totalorder %s1476_s5, %s1880_s11  ;;  %p1886_p0 = scmp.lt.s32.totalorder %s1880_s11, %s1880_s11 }
 0x2ec   :  { %p1887_p1 = por %p1886_p0, %p1885_p13 }
 0x2ee   :  { %p1888_p2 = pnand %p1887_p1, %p1881_p12 }
 0x2f0   :  { %1891 = shalt.err (!%p1888_p2)
}
 0x2f1   :  { %1478 = dma.vmem_to_hbm [thread:$0]  %s1476_s5, 64, %s3347_s13, [#allocation13]  }
 0x2f2   :  { %1906 = dma.done.wait [#allocation4], 32  }
 0x2f3   :  { %1907 = vsyncadd [#allocation4], 4294967264 }
 0x2f4   :  { %1908 = dma.done.wait [#allocation13], 96  }
 0x2f5   :  { %1909 = vsyncadd [#allocation13], 4294967200 }
 0x2f6   :  { %1910 = dma.done.wait [#allocation16], 256  }
 0x2f7   :  { %1911 = vsyncadd [#allocation16], 4294967040 }
 0x2f8   :  { %1501 = vsyncpa [#allocation3], 1 }
 0x2f9   :  { %1502 = vsyncpa [#allocation6], 1 }
 0x2fa   :  { %1503 = vsyncpa [#allocation9], 1 }
 0x2fb   :  { %1504 = vsyncpa [#allocation4], 1 }
 0x2fc   :  { %1505 = vsyncpa [#allocation13], 1 }
 0x2fd   :  { %1506 = vsyncpa [#allocation16], 1 }

</bundles_post_ra>
